<compile_context>
chip_gen: v5e
topology: v5e:2x2
jax: 0.10.0
libtpu: 0.0.40
codegen_flags: <defaults>
</compile_context>

<pallas_src>
import functools
import random as pyrandom

import numpy as np

import jax
import jax.numpy as jnp
from jax.experimental import pallas as pl
from jax.experimental.pallas import tpu as pltpu


# --------------------------------------------------------------------------- #
# Kernel
# --------------------------------------------------------------------------- #
def _resize_kernel(x_ref, wh_ref, wwt_ref, o_ref, tmp_ref):
    # x_ref  : (B, H, W)     batch of flattened (n, c) slices, native dtype
    # wh_ref : (S, H)        row-interpolation matrix, f32 (resident)
    # wwt_ref: (W, S)        column-interpolation matrix (pre-transposed), f32 (resident)
    # o_ref  : (B, S, S)     output block
    # tmp_ref: (B*S, W)      f32 scratch holding the H-resized images
    B, H, W = x_ref.shape
    S = o_ref.shape[1]
    wh = wh_ref[...]

    # (1) Cheap per-image H-resize (K = H is tiny). Each small dot result is stored
    # into the scratch immediately so its live range is bounded.
    for b in range(B):
        tmp_ref[b * S:(b + 1) * S] = jnp.dot(
            wh, x_ref[b], preferred_element_type=jnp.float32)

    # (2) Expensive W-resize as a single batch-folded MXU call with stationary wwt:
    # (B*S, W) @ (W, S) -> (B*S, S), written straight into o_ref's (B, S, S) layout.
    out = jnp.dot(tmp_ref[...], wwt_ref[...], preferred_element_type=jnp.float32)
    o_ref[...] = out.reshape(B, S, S).astype(o_ref.dtype)


# --------------------------------------------------------------------------- #
# Interpolation matrices (host numpy, pure functions of static sizes)
# --------------------------------------------------------------------------- #
@functools.lru_cache(maxsize=None)
def _interp_matrix_np(out_size, in_size):
    """1-D bilinear interpolation matrix, align_corners=True, float32."""
    scale = 0.0 if out_size == 1 else (in_size - 1) / (out_size - 1)
    src = np.arange(out_size, dtype=np.float64) * scale
    lo = np.clip(np.floor(src).astype(np.int64), 0, in_size - 1)
    hi = np.minimum(lo + 1, in_size - 1)
    frac = (src - lo).astype(np.float32)
    w = np.zeros((out_size, in_size), dtype=np.float32)
    rows = np.arange(out_size)
    np.add.at(w, (rows, lo), np.float32(1.0) - frac)
    np.add.at(w, (rows, hi), frac)
    return w  # (out_size, in_size)


# --------------------------------------------------------------------------- #
# Generation-aware sizing
# --------------------------------------------------------------------------- #
def _tpu_params():
    """(vmem_limit_bytes, block-sizing budget, tensorcores-per-device). Conservative fallback."""
    vmem_bytes = 64 * 1024 * 1024   # v7x per-TC physical (safe lower bound everywhere)
    num_cores = 2                   # assume megacore unless we can tell otherwise
    try:
        info = pltpu.get_tpu_info()
        vmem_bytes = int(getattr(info, "vmem_capacity_bytes", vmem_bytes))
        for name in ("num_cores", "tensorcore_count", "core_count", "num_tensorcores"):
            v = getattr(info, name, None)
            if v:
                num_cores = int(v)
                break
    except Exception:
        pass
    num_cores = max(1, min(2, num_cores))
    vmem_limit = (vmem_bytes * 3) // 4      # 48 MiB on v7x, 96 MiB on v5e/v6e
    budget = vmem_limit // 2                # headroom for pipelining + compiler scratch
    return vmem_limit, budget, num_cores


def _choose_batch(nc, h, w, s, itemsize, budget, num_cores):
    """Images per grid step: fill the VMEM budget, keep >= 2 grid steps per TensorCore."""
    pad_lane = lambda v: -(-v // 128) * 128
    pad_sub = lambda v: -(-v // 8) * 8
    per_img = (
        2 * pad_sub(s) * pad_lane(s) * itemsize     # output block (double-buffered)
        + 2 * pad_sub(h) * pad_lane(w) * itemsize   # input block (double-buffered)
        + pad_sub(s) * pad_lane(w) * 4              # f32 H-resized scratch rows
        + pad_sub(s) * pad_lane(s) * 4              # f32 folded-dot result before cast/store
    )
    b = max(1, min(budget // per_img, 64))
    if nc > 1:
        # >= 2 steps per core so each core's output write-back pipelines behind compute.
        min_steps = 2 * num_cores
        b = min(b, max(1, -(-nc // min_steps)))
    return int(min(b, nc))


# --------------------------------------------------------------------------- #
# pallas_call wrapper (traced inside jit; all shapes static)
# --------------------------------------------------------------------------- #
def _pallas_resize(xf, out_size):
    """xf: (NC, H, W) -> (NC, out_size, out_size), bilinear, align_corners=True."""
    NC, H, W = xf.shape
    S = out_size
    wh = jnp.asarray(_interp_matrix_np(S, H))        # (S, H)  f32
    wwt = jnp.asarray(_interp_matrix_np(S, W).T)     # (W, S)  f32

    vmem_limit, budget, num_cores = _tpu_params()
    B = _choose_batch(NC, H, W, S, xf.dtype.itemsize, budget, num_cores)
    grid = (pl.cdiv(NC, B),)

    flops = 2 * NC * (S * H * W + S * W * S)
    bytes_accessed = NC * (H * W + S * S) * xf.dtype.itemsize + (S * H + W * S) * 4

    return pl.pallas_call(
        _resize_kernel,
        out_shape=jax.ShapeDtypeStruct((NC, S, S), xf.dtype),
        grid_spec=pltpu.PrefetchScalarGridSpec(
            num_scalar_prefetch=0,
            grid=grid,
            in_specs=[
                pl.BlockSpec((B, H, W), lambda i: (i, 0, 0)),
                pl.BlockSpec((S, H), lambda i: (0, 0)),    # wh, resident
                pl.BlockSpec((W, S), lambda i: (0, 0)),    # wwt, resident
            ],
            out_specs=pl.BlockSpec((B, S, S), lambda i: (i, 0, 0)),
            scratch_shapes=[pltpu.VMEM((B * S, W), jnp.float32)],
        ),
        compiler_params=pltpu.CompilerParams(
            dimension_semantics=("parallel",),
            vmem_limit_bytes=vmem_limit,
        ),
        cost_estimate=pl.CostEstimate(
            flops=flops, transcendentals=0, bytes_accessed=bytes_accessed),
    )(xf, wh, wwt)


@functools.partial(jax.jit, static_argnames=("out_size",))
def _resize_one(x, out_size):
    N, C, H, W = x.shape
    out = _pallas_resize(x.reshape(N * C, H, W), out_size)
    return out.reshape(N, C, out_size, out_size)


@functools.partial(jax.jit, static_argnames=("out_size",))
def _resize_pair_fused(x, other, out_size):
    # Fuse both resizes into one pallas_call over the concatenated NC axis.
    N, C, H, W = x.shape
    N2, C2 = other.shape[0], other.shape[1]
    nc, nc2 = N * C, N2 * C2
    fused = jnp.concatenate([x.reshape(nc, H, W), other.reshape(nc2, H, W)], axis=0)
    out = _pallas_resize(fused, out_size)
    return (out[:nc].reshape(N, C, out_size, out_size),
            out[nc:].reshape(N2, C2, out_size, out_size))


def bilinear_resize_nchw(x, out_size):
    """Resize NCHW tensor to (out_size, out_size), bilinear, align_corners=True."""
    return _resize_one(x, int(out_size))


# --------------------------------------------------------------------------- #
# Module equivalent
# --------------------------------------------------------------------------- #
class Resize:
    """JAX/Pallas equivalent of the PyTorch `Resize` module."""

    def __init__(self, seed=0):
        self.sizes = [i for i in range(192, 296, 8)]
        # Deterministic stand-in for random.choice in the PyTorch forward.
        self._rng = pyrandom.Random(seed)

    def __call__(self, input_tensor, other_tensor=None):
        output_size = self._rng.choice(self.sizes)
        if other_tensor is None:
            return _resize_one(input_tensor, output_size)
        if (input_tensor.shape[2:] == other_tensor.shape[2:]
                and input_tensor.dtype == other_tensor.dtype):
            return _resize_pair_fused(input_tensor, other_tensor, output_size)
        return (_resize_one(input_tensor, output_size),
                _resize_one(other_tensor, output_size))


if __name__ == "__main__":
    key = jax.random.PRNGKey(0)
    k1, k2 = jax.random.split(key)
    x = jax.random.normal(k1, (2, 4, 16, 16), dtype=jnp.float32)      # NCHW
    other = jax.random.normal(k2, (2, 4, 16, 16), dtype=jnp.float32)  # NCHW

    resize = Resize(seed=0)
    y, y_other = resize(x, other)
    y = jax.block_until_ready(y)
    y_other = jax.block_until_ready(y_other)

    # Cross-check kernel result against a pure-JAX einsum reference built from the
    # same interpolation matrices.
    S = y.shape[-1]
    wh = jnp.asarray(_interp_matrix_np(S, x.shape[2]))
    wwt = jnp.asarray(_interp_matrix_np(S, x.shape[3]).T)
    ref = jnp.einsum("oh,nchw,wq->ncoq", wh, x, wwt)
    ref_other = jnp.einsum("oh,nchw,wq->ncoq", wh, other, wwt)
    assert y.shape == (2, 4, S, S)
    assert y_other.shape == (2, 4, S, S)
    assert float(jnp.max(jnp.abs(y - ref))) < 1e-4
    assert float(jnp.max(jnp.abs(y_other - ref_other))) < 1e-4

    print("KERNEL_OK")
</pallas_src>

<mosaic_0001>
module attributes {stable_mosaic.version = 11 : i64} {
  func.func @_resize_kernel(%arg0: i32, %arg1: memref<4x16x16xf32, #tpu.memory_space<vmem>>, %arg2: memref<240x16xf32, #tpu.memory_space<vmem>>, %arg3: memref<16x240xf32, #tpu.memory_space<vmem>>, %arg4: memref<4x240x240xf32, #tpu.memory_space<vmem>>, %arg5: memref<960x16xf32, #tpu.memory_space<vmem>>) attributes {dimension_semantics = [#tpu.dimension_semantics<parallel>], iteration_bounds = array<i64: 4>, scalar_prefetch = 0 : i64, scratch_operands = 1 : i64, tpu.core_type = #tpu.core_type<tc>, window_params = [{transform_indices = @transform_0, window_bounds = array<i64: 4, 16, 16>}, {pipeline_mode = #tpu.pipeline_mode<synchronous>, transform_indices = @transform_1, window_bounds = array<i64: 240, 16>}, {pipeline_mode = #tpu.pipeline_mode<synchronous>, transform_indices = @transform_2, window_bounds = array<i64: 16, 240>}, {transform_indices = @transform_3, window_bounds = array<i64: 4, 240, 240>}]} {
    %c0 = arith.constant 0 : index
    %c0_0 = arith.constant 0 : index
    %0 = vector.load %arg2[%c0, %c0_0] : memref<240x16xf32, #tpu.memory_space<vmem>>, vector<240x16xf32>
    %c0_1 = arith.constant 0 : index
    %c0_2 = arith.constant 0 : index
    %c0_3 = arith.constant 0 : index
    %1 = vector.load %arg1[%c0_1, %c0_2, %c0_3] : memref<4x16x16xf32, #tpu.memory_space<vmem>>, vector<1x16x16xf32>
    %2 = vector.shape_cast %1 : vector<1x16x16xf32> to vector<16x16xf32>
    %cst = arith.constant dense<0.000000e+00> : vector<240x16xf32>
    %3 = tpu.matmul %0, %2, %cst {dimension_numbers = #tpu.dot_dimension_numbers<[1], [0], [0], [1], [0, 0, 1, 1], [], []>} : vector<240x16xf32>, vector<16x16xf32>, vector<240x16xf32> -> vector<240x16xf32>
    %c0_4 = arith.constant 0 : index
    %c0_5 = arith.constant 0 : index
    %4 = vector.load %arg5[%c0_4, %c0_5] : memref<960x16xf32, #tpu.memory_space<vmem>>, vector<240x16xf32>
    tpu.vector_store %arg5[%c0_4, %c0_5], %3 {strides = array<i32>} : memref<960x16xf32, #tpu.memory_space<vmem>>, vector<240x16xf32>,
    %c1 = arith.constant 1 : index
    %c0_6 = arith.constant 0 : index
    %c0_7 = arith.constant 0 : index
    %5 = vector.load %arg1[%c1, %c0_6, %c0_7] : memref<4x16x16xf32, #tpu.memory_space<vmem>>, vector<1x16x16xf32>
    %6 = vector.shape_cast %5 : vector<1x16x16xf32> to vector<16x16xf32>
    %cst_8 = arith.constant dense<0.000000e+00> : vector<240x16xf32>
    %7 = tpu.matmul %0, %6, %cst_8 {dimension_numbers = #tpu.dot_dimension_numbers<[1], [0], [0], [1], [0, 0, 1, 1], [], []>} : vector<240x16xf32>, vector<16x16xf32>, vector<240x16xf32> -> vector<240x16xf32>
    %c240 = arith.constant 240 : index
    %c0_9 = arith.constant 0 : index
    %8 = vector.load %arg5[%c240, %c0_9] : memref<960x16xf32, #tpu.memory_space<vmem>>, vector<240x16xf32>
    tpu.vector_store %arg5[%c240, %c0_9], %7 {strides = array<i32>} : memref<960x16xf32, #tpu.memory_space<vmem>>, vector<240x16xf32>,
    %c2 = arith.constant 2 : index
    %c0_10 = arith.constant 0 : index
    %c0_11 = arith.constant 0 : index
    %9 = vector.load %arg1[%c2, %c0_10, %c0_11] : memref<4x16x16xf32, #tpu.memory_space<vmem>>, vector<1x16x16xf32>
    %10 = vector.shape_cast %9 : vector<1x16x16xf32> to vector<16x16xf32>
    %cst_12 = arith.constant dense<0.000000e+00> : vector<240x16xf32>
    %11 = tpu.matmul %0, %10, %cst_12 {dimension_numbers = #tpu.dot_dimension_numbers<[1], [0], [0], [1], [0, 0, 1, 1], [], []>} : vector<240x16xf32>, vector<16x16xf32>, vector<240x16xf32> -> vector<240x16xf32>
    %c480 = arith.constant 480 : index
    %c0_13 = arith.constant 0 : index
    %12 = vector.load %arg5[%c480, %c0_13] : memref<960x16xf32, #tpu.memory_space<vmem>>, vector<240x16xf32>
    tpu.vector_store %arg5[%c480, %c0_13], %11 {strides = array<i32>} : memref<960x16xf32, #tpu.memory_space<vmem>>, vector<240x16xf32>,
    %c3 = arith.constant 3 : index
    %c0_14 = arith.constant 0 : index
    %c0_15 = arith.constant 0 : index
    %13 = vector.load %arg1[%c3, %c0_14, %c0_15] : memref<4x16x16xf32, #tpu.memory_space<vmem>>, vector<1x16x16xf32>
    %14 = vector.shape_cast %13 : vector<1x16x16xf32> to vector<16x16xf32>
    %cst_16 = arith.constant dense<0.000000e+00> : vector<240x16xf32>
    %15 = tpu.matmul %0, %14, %cst_16 {dimension_numbers = #tpu.dot_dimension_numbers<[1], [0], [0], [1], [0, 0, 1, 1], [], []>} : vector<240x16xf32>, vector<16x16xf32>, vector<240x16xf32> -> vector<240x16xf32>
    %c720 = arith.constant 720 : index
    %c0_17 = arith.constant 0 : index
    %16 = vector.load %arg5[%c720, %c0_17] : memref<960x16xf32, #tpu.memory_space<vmem>>, vector<240x16xf32>
    tpu.vector_store %arg5[%c720, %c0_17], %15 {strides = array<i32>} : memref<960x16xf32, #tpu.memory_space<vmem>>, vector<240x16xf32>,
    %c0_18 = arith.constant 0 : index
    %c0_19 = arith.constant 0 : index
    %17 = vector.load %arg5[%c0_18, %c0_19] : memref<960x16xf32, #tpu.memory_space<vmem>>, vector<960x16xf32>
    %c0_20 = arith.constant 0 : index
    %c0_21 = arith.constant 0 : index
    %18 = vector.load %arg3[%c0_20, %c0_21] : memref<16x240xf32, #tpu.memory_space<vmem>>, vector<16x240xf32>
    %cst_22 = arith.constant dense<0.000000e+00> : vector<960x240xf32>
    %19 = tpu.matmul %17, %18, %cst_22 {dimension_numbers = #tpu.dot_dimension_numbers<[1], [0], [0], [1], [0, 0, 1, 1], [], []>} : vector<960x16xf32>, vector<16x240xf32>, vector<960x240xf32> -> vector<960x240xf32>
    %20 = vector.shape_cast %19 : vector<960x240xf32> to vector<4x240x240xf32>
    %c0_23 = arith.constant 0 : index
    %c0_24 = arith.constant 0 : index
    %c0_25 = arith.constant 0 : index
    %21 = vector.load %arg4[%c0_23, %c0_24, %c0_25] : memref<4x240x240xf32, #tpu.memory_space<vmem>>, vector<4x240x240xf32>
    tpu.vector_store %arg4[%c0_23, %c0_24, %c0_25], %20 {strides = array<i32>} : memref<4x240x240xf32, #tpu.memory_space<vmem>>, vector<4x240x240xf32>,
    return
  }
  func.func @transform_0(%arg0: i32) -> (i32, i32, i32) {
    %c0_i32 = arith.constant 0 : i32
    %c0_i32_0 = arith.constant 0 : i32
    %c0_i32_1 = arith.constant 0 : i32
    return %arg0, %c0_i32, %c0_i32_0 : i32, i32, i32
  }
  func.func @transform_1(%arg0: i32) -> (i32, i32) {
    %c0_i32 = arith.constant 0 : i32
    %c0_i32_0 = arith.constant 0 : i32
    %c0_i32_1 = arith.constant 0 : i32
    return %c0_i32, %c0_i32_0 : i32, i32
  }
  func.func @transform_2(%arg0: i32) -> (i32, i32) {
    %c0_i32 = arith.constant 0 : i32
    %c0_i32_0 = arith.constant 0 : i32
    %c0_i32_1 = arith.constant 0 : i32
    return %c0_i32, %c0_i32_0 : i32, i32
  }
  func.func @transform_3(%arg0: i32) -> (i32, i32, i32) {
    %c0_i32 = arith.constant 0 : i32
    %c0_i32_0 = arith.constant 0 : i32
    %c0_i32_1 = arith.constant 0 : i32
    return %arg0, %c0_i32, %c0_i32_0 : i32, i32, i32
  }
}

</mosaic_0001>

<bundles_post_ra>
// kernel: _resize_pair_fused.1
= control target key start
LH: loop header
LB: loop body
LE: loop exit
PB: predicated region body
PF: predicated region fallthrough
CT: control target
= control target key end

     0   :  { %8 = vsyncpa [#allocation4], 0  ;;  %s3866_s0 = inlined_call_operand.vmem [shape: f32[16,16,16], index: 0, kind: input, shape index: {}]   ;;  %s3867_s1 = inlined_call_operand.hbm [shape: f32[240,16], index: 1, kind: input, shape index: {}]   ;;  %s3868_s2 = inlined_call_operand.hbm [shape: f32[16,240], index: 2, kind: input, shape index: {}]   ;;  %s3869_s3 = inlined_call_operand.vmem [shape: f32[16,240,240], index: 3, kind: output, shape index: {}]  }
   0x1   :  { %9 = vsyncpa [#allocation6], 0  ;;  %s2975_s12 = smov 0  }
   0x2 LB: > { %s125_s15 = sshll.u32 %s3867_s1, 4  ;;  %s2452_s16 = sadd.s32 4294967295, %s2947_s12   ;;  %s2947_s12 = sphi %s2975_s12, %s15_s12   ;;  %s126_s15 = int_to_ptr.hbm [resolvable:$true] %s125_s15 }
   0x3   : > { %p2454_p0 = scmp.ge.s32.totalorder %s2947_s12, 1  ;;  %p114_p1 = scmp.lt.s32.totalorder %s2947_s12, 5 }
   0x4   : > { %p2986_p2 = scmp.eq.s32.totalorder %s2452_s16, 0  ;;  %s2949_s19 = smov [#allocation3]  }
   0x5   : > { %p2990_p3 = pnand %p2454_p0, %p114_p1  ;;  %s127_s20 = sshll.u32 %s2949_s19, 4  ;;  %s128_s20 = int_to_ptr.vmem [resolvable:$true] %s127_s20 }
   0x6   : > { %s139_s23 = sshll.u32 %s3868_s2, 4  ;;  %s2950_s24 = smov [#allocation5]   ;;  %s140_s23 = int_to_ptr.hbm [resolvable:$true] %s139_s23 }
   0x7   : > { %p2848_p4 = pneg %p2990_p3  ;;  %s141_s25 = sshll.u32 %s2950_s24, 4  ;;  %s142_s25 = int_to_ptr.vmem [resolvable:$true] %s141_s25 }
   0x8   : > { %s2951_s26 = smov 128   ;;  %s2952_s27 = smov 8  }
   0x9   : > { %p2849_p5 = pnand %p2986_p2, %p2848_p4  ;;  %s2953_s28 = smov 256  }
   0xa   : > { %s2954_s29 = smov 16   ;;  %167 = sbr.rel (%p2990_p3) target bundleno = 876 (0x36c), region = 32 }
   0xb   : > { %2851 = dma.hbm_to_vmem [thread:$0]  (!%p2849_p5), %s126_s15, 3840, %s128_s20, [#allocation4], %s2951_s26, %s2951_s26, %s2952_s27  }
   0xc   : > { %2854 = dma.hbm_to_vmem [thread:$0]  (!%p2849_p5), %s140_s23, 512, %s142_s25, [#allocation6], %s2953_s28, %s2953_s28, %s2954_s29  }
   0xf   : > { %2938 = dma.done.wait (%p2986_p2), [#allocation4], 3840  }
  0x10   : > { %2940 = vsyncadd (%p2986_p2), [#allocation4], 4294963456 }
  0x11   : > { %2942 = dma.done.wait (%p2986_p2), [#allocation6], 512  }
  0x12   : > { %2944 = vsyncadd (%p2986_p2), [#allocation6], 4294966784  ;;  %s2461_s30 = sshll.u32 %s2452_s16, 2  ;;  %v213_v8 = vld [vmem:[#allocation3] sm:$0xff]  ;;  %vm245_vm0 = vcmask 130048   ;;  %v1016_v10 = vld [vmem:[#allocation5 + $0x18] sm:$0xff] }
  0x13   : > { %p200_p6 = scmp.lt.s32.totalorder %s2461_s30, 15  ;;  %v1015_v9 = vld [vmem:[#allocation5 + $0x10] sm:$0xff]  ;;  %v214_v11 = vld [vmem:[#allocation3 + $0x8] sm:$0xff]  ;;  %v215_v12 = vld [vmem:[#allocation3 + $0x10] sm:$0xff]  ;;  %vm2132_vm1 = vcmask 916480  }
  0x14   : > { %v216_v13 = vld [vmem:[#allocation3 + $0x18] sm:$0xff]  ;;  %v217_v14 = vld [vmem:[#allocation3 + $0x20] sm:$0xff]  ;;  %v218_v15 = vld [vmem:[#allocation3 + $0x28] sm:$0xff] }
  0x15   : > { %s3873_s30 = smov (!%p200_p6, %s2461_s30), 15  ;;  %v219_v16 = vld [vmem:[#allocation3 + $0x30] sm:$0xff]  ;;  %v220_v17 = vld [vmem:[#allocation3 + $0x38] sm:$0xff]  ;;  %v221_v18 = vld [vmem:[#allocation3 + $0x40] sm:$0xff] }
  0x16   : > { %s2834_s4 = sshll.u32 %s3873_s30, 4  ;;  %v222_v19 = vld [vmem:[#allocation3 + $0x48] sm:$0xff]  ;;  %v223_v20 = vld [vmem:[#allocation3 + $0x50] sm:$0xff]  ;;  %v224_v21 = vld [vmem:[#allocation3 + $0x58] sm:$0xff]  ;;  %s2839_s8 = smul.u32 480, %s3873_s30 }
  0x17   : > { %s204_s7 = scalar_lea.vmem %s3866_s0, %s2834_s4  ;;  %v1013_v22 = vld [vmem:[#allocation5] sm:$0xff]  ;;  %v1014_v23 = vld [vmem:[#allocation5 + $0x8] sm:$0xff]  ;;  %v225_v24 = vld [vmem:[#allocation3 + $0x60] sm:$0xff] }
  0x18   : > { %v244_v0 = vld [vmem:[%s204_s7 + $0x8] sm:$0xff]  ;;  %v2497_v1 = vld [vmem:[%s204_s7 + $0x18] sm:$0xff]  ;;  %v243_v4 = vld [vmem:[%s204_s7] sm:$0xff]  ;;  %s3323_s11 = scalar_lea.vmem %s3869_s3, %s2839_s8 }
  0x19   : > { %v2529_v2 = vld [vmem:[%s204_s7 + $0x28] sm:$0xff]  ;;  %350 = vmatpush.msra.mxu0 %v244_v0  ;;  %490 = vmatpush.msra.mxu1 %v2497_v1  ;;  %v2561_v3 = vld [vmem:[%s204_s7 + $0x38] sm:$0xff]  ;;  %v2496_v5 = vld [vmem:[%s204_s7 + $0x10] sm:$0xff] }
  0x1a   : > { %630 = vmatpush.msra.mxu2 %v2529_v2  ;;  %770 = vmatpush.msra.mxu3 %v2561_v3  ;;  %v2528_v6 = vld [vmem:[%s204_s7 + $0x20] sm:$0xff]  ;;  %v2560_v7 = vld [vmem:[%s204_s7 + $0x30] sm:$0xff]  ;;  %v226_v25 = vld [vmem:[#allocation3 + $0x68] sm:$0xff] }
  0x1b   : > { %351 = vmatpush.msra.mxu0 %v243_v4  ;;  %491 = vmatpush.msra.mxu1 %v2496_v5  ;;  %v227_v26 = vld [vmem:[#allocation3 + $0x70] sm:$0xff]  ;;  %v228_v27 = vld [vmem:[#allocation3 + $0x78] sm:$0xff]  ;;  %v229_v30 = vld [vmem:[#allocation3 + $0x80] sm:$0xff] }
  0x1c   : > { %631 = vmatpush.msra.mxu2 %v2528_v6  ;;  %771 = vmatpush.msra.mxu3 %v2560_v7  ;;  %v230_v35 = vld [vmem:[#allocation3 + $0x88] sm:$0xff]  ;;  %v231_v40 = vld [vmem:[#allocation3 + $0x90] sm:$0xff]  ;;  %v232_v45 = vld [vmem:[#allocation3 + $0x98] sm:$0xff] }
  0x1d   : > { %2466 = vmatmul.msk.f32.vlgmr.msra.gmra.mxu0 %vm245_vm0, %v213_v8  ;;  %2498 = vmatmul.msk.f32.vlgmr.msra.gmra.mxu1 %vm245_vm0, %v213_v8  ;;  %v233_v50 = vld [vmem:[#allocation3 + $0xa0] sm:$0xff]  ;;  %v234_v55 = vld [vmem:[#allocation3 + $0xa8] sm:$0xff]  ;;  %v235_v60 = vld [vmem:[#allocation3 + $0xb0] sm:$0xff] }
  0x1e   : > { %2530 = vmatmul.msk.f32.vlgmr.msra.gmra.mxu2 %vm245_vm0, %v213_v8  ;;  %2562 = vmatmul.msk.f32.vlgmr.msra.gmra.mxu3 %vm245_vm0, %v213_v8  ;;  %v236_v1 = vld [vmem:[#allocation3 + $0xb8] sm:$0xff]  ;;  %v237_v6 = vld [vmem:[#allocation3 + $0xc0] sm:$0xff] }
  0x1f   : > { %2835 = vmatpush.msrb.mxu2 %v1015_v9  ;;  %2837 = vmatpush.msrb.mxu3 %v1016_v10 }
  0x20   : > { %1391 = vmatpush.msrb.mxu0 %v1015_v9  ;;  %1768 = vmatpush.msrb.mxu1 %v1016_v10 }
  0x21   : > { %2836 = vmatpush.msrb.mxu2 %v1013_v22  ;;  %2838 = vmatpush.msrb.mxu3 %v1014_v23 }
  0x22   : > { %1392 = vmatpush.msrb.mxu0 %v1013_v22  ;;  %1769 = vmatpush.msrb.mxu1 %v1014_v23 }
  0x25   : > { %2467 = vmatmul.msk.f32.gmra.mxu0 %vm245_vm0, %v214_v11  ;;  %2499 = vmatmul.msk.f32.gmra.mxu1 %vm245_vm0, %v214_v11 }
  0x26   : > { %2531 = vmatmul.msk.f32.gmra.mxu2 %vm245_vm0, %v214_v11  ;;  %2563 = vmatmul.msk.f32.gmra.mxu3 %vm245_vm0, %v214_v11  ;;  %v238_v11 = vld [vmem:[#allocation3 + $0xc8] sm:$0xff] }
  0x2d   : > { %2468 = vmatmul.msk.f32.gmra.mxu0 %vm245_vm0, %v215_v12  ;;  %2500 = vmatmul.msk.f32.gmra.mxu1 %vm245_vm0, %v215_v12 }
  0x2e   : > { %2532 = vmatmul.msk.f32.gmra.mxu2 %vm245_vm0, %v215_v12  ;;  %2564 = vmatmul.msk.f32.gmra.mxu3 %vm245_vm0, %v215_v12 }
  0x35   : > { %2469 = vmatmul.msk.f32.gmra.mxu0 %vm245_vm0, %v216_v13  ;;  %2501 = vmatmul.msk.f32.gmra.mxu1 %vm245_vm0, %v216_v13 }
  0x36   : > { %2533 = vmatmul.msk.f32.gmra.mxu2 %vm245_vm0, %v216_v13  ;;  %2565 = vmatmul.msk.f32.gmra.mxu3 %vm245_vm0, %v216_v13 }
  0x3d   : > { %2470 = vmatmul.msk.f32.gmra.mxu0 %vm245_vm0, %v217_v14  ;;  %2502 = vmatmul.msk.f32.gmra.mxu1 %vm245_vm0, %v217_v14 }
  0x3e   : > { %2534 = vmatmul.msk.f32.gmra.mxu2 %vm245_vm0, %v217_v14  ;;  %2566 = vmatmul.msk.f32.gmra.mxu3 %vm245_vm0, %v217_v14 }
  0x45   : > { %2471 = vmatmul.msk.f32.gmra.mxu0 %vm245_vm0, %v218_v15  ;;  %2503 = vmatmul.msk.f32.gmra.mxu1 %vm245_vm0, %v218_v15 }
  0x46   : > { %2535 = vmatmul.msk.f32.gmra.mxu2 %vm245_vm0, %v218_v15  ;;  %2567 = vmatmul.msk.f32.gmra.mxu3 %vm245_vm0, %v218_v15 }
  0x4d   : > { %2472 = vmatmul.msk.f32.gmra.mxu0 %vm245_vm0, %v219_v16  ;;  %2504 = vmatmul.msk.f32.gmra.mxu1 %vm245_vm0, %v219_v16 }
  0x4e   : > { %2536 = vmatmul.msk.f32.gmra.mxu2 %vm245_vm0, %v219_v16  ;;  %2568 = vmatmul.msk.f32.gmra.mxu3 %vm245_vm0, %v219_v16  ;;  %v239_v16 = vld [vmem:[#allocation3 + $0xd0] sm:$0xff] }
  0x55   : > { %2473 = vmatmul.msk.f32.gmra.mxu0 %vm245_vm0, %v220_v17  ;;  %2505 = vmatmul.msk.f32.gmra.mxu1 %vm245_vm0, %v220_v17 }
  0x56   : > { %2537 = vmatmul.msk.f32.gmra.mxu2 %vm245_vm0, %v220_v17  ;;  %2569 = vmatmul.msk.f32.gmra.mxu3 %vm245_vm0, %v220_v17 }
  0x5d   : > { %2474 = vmatmul.msk.f32.gmra.mxu0 %vm245_vm0, %v221_v18  ;;  %2506 = vmatmul.msk.f32.gmra.mxu1 %vm245_vm0, %v221_v18 }
  0x5e   : > { %2538 = vmatmul.msk.f32.gmra.mxu2 %vm245_vm0, %v221_v18  ;;  %2570 = vmatmul.msk.f32.gmra.mxu3 %vm245_vm0, %v221_v18 }
  0x65   : > { %2475 = vmatmul.msk.f32.gmra.mxu0 %vm245_vm0, %v222_v19  ;;  %2507 = vmatmul.msk.f32.gmra.mxu1 %vm245_vm0, %v222_v19 }
  0x66   : > { %2539 = vmatmul.msk.f32.gmra.mxu2 %vm245_vm0, %v222_v19  ;;  %2571 = vmatmul.msk.f32.gmra.mxu3 %vm245_vm0, %v222_v19 }
  0x6d   : > { %2476 = vmatmul.msk.f32.gmra.mxu0 %vm245_vm0, %v223_v20  ;;  %2508 = vmatmul.msk.f32.gmra.mxu1 %vm245_vm0, %v223_v20 }
  0x6e   : > { %2540 = vmatmul.msk.f32.gmra.mxu2 %vm245_vm0, %v223_v20  ;;  %2572 = vmatmul.msk.f32.gmra.mxu3 %vm245_vm0, %v223_v20 }
  0x75   : > { %2477 = vmatmul.msk.f32.gmra.mxu0 %vm245_vm0, %v224_v21  ;;  %2509 = vmatmul.msk.f32.gmra.mxu1 %vm245_vm0, %v224_v21 }
  0x76   : > { %2541 = vmatmul.msk.f32.gmra.mxu2 %vm245_vm0, %v224_v21  ;;  %2573 = vmatmul.msk.f32.gmra.mxu3 %vm245_vm0, %v224_v21  ;;  %v240_v21 = vld [vmem:[#allocation3 + $0xd8] sm:$0xff] }
  0x7d   : > { %2478 = vmatmul.msk.f32.gmra.mxu0 %vm245_vm0, %v225_v24  ;;  %2510 = vmatmul.msk.f32.gmra.mxu1 %vm245_vm0, %v225_v24 }
  0x7e   : > { %2542 = vmatmul.msk.f32.gmra.mxu2 %vm245_vm0, %v225_v24  ;;  %2574 = vmatmul.msk.f32.gmra.mxu3 %vm245_vm0, %v225_v24 }
  0x85   : > { %2479 = vmatmul.msk.f32.gmra.mxu0 %vm245_vm0, %v226_v25  ;;  %2511 = vmatmul.msk.f32.gmra.mxu1 %vm245_vm0, %v226_v25 }
  0x86   : > { %2543 = vmatmul.msk.f32.gmra.mxu2 %vm245_vm0, %v226_v25  ;;  %2575 = vmatmul.msk.f32.gmra.mxu3 %vm245_vm0, %v226_v25 }
  0x8d   : > { %2480 = vmatmul.msk.f32.gmra.mxu0 %vm245_vm0, %v227_v26  ;;  %2512 = vmatmul.msk.f32.gmra.mxu1 %vm245_vm0, %v227_v26 }
  0x8e   : > { %2544 = vmatmul.msk.f32.gmra.mxu2 %vm245_vm0, %v227_v26  ;;  %2576 = vmatmul.msk.f32.gmra.mxu3 %vm245_vm0, %v227_v26  ;;  %v241_v26 = vld [vmem:[#allocation3 + $0xe0] sm:$0xff] }
  0x95   : > { %2481 = vmatmul.msk.f32.gmra.mxu0 %vm245_vm0, %v228_v27  ;;  %2513 = vmatmul.msk.f32.gmra.mxu1 %vm245_vm0, %v228_v27 }
  0x96   : > { %2545 = vmatmul.msk.f32.gmra.mxu2 %vm245_vm0, %v228_v27  ;;  %2577 = vmatmul.msk.f32.gmra.mxu3 %vm245_vm0, %v228_v27 }
  0x9a   : > { %v353_v28 = vpop.f32.mrf.mxu0  ;;  %v493_v29 = vpop.f32.mrf.mxu1 }
  0x9b   : > { %443 = vst.msk [vmem:[#allocation2] sm:$0xff] %vm245_vm0, %v353_v28 }
  0x9c   : > { %583 = vst.msk [vmem:[#allocation2 + $0xf0] sm:$0xff] %vm245_vm0, %v493_v29 }
  0x9d   : > { %2482 = vmatmul.msk.f32.gmra.mxu0 %vm245_vm0, %v229_v30  ;;  %2514 = vmatmul.msk.f32.gmra.mxu1 %vm245_vm0, %v229_v30 }
  0x9e   : > { %2546 = vmatmul.msk.f32.gmra.mxu2 %vm245_vm0, %v229_v30  ;;  %2578 = vmatmul.msk.f32.gmra.mxu3 %vm245_vm0, %v229_v30 }
  0xa1   : > { %v633_v31 = vpop.f32.mrf.mxu2  ;;  %v773_v32 = vpop.f32.mrf.mxu3 }
  0xa2   : > { %723 = vst.msk [vmem:[#allocation2 + $0x1e0] sm:$0xff] %vm245_vm0, %v633_v31  ;;  %v356_v33 = vpop.f32.mrf.mxu0  ;;  %v496_v34 = vpop.f32.mrf.mxu1  ;;  %v242_v31 = vld [vmem:[#allocation3 + $0xe8] sm:$0xff] }
  0xa3   : > { %863 = vst.msk [vmem:[#allocation2 + $0x2d0] sm:$0xff] %vm245_vm0, %v773_v32 }
  0xa4   : > { %444 = vst.msk [vmem:[#allocation2 + $0x8] sm:$0xff] %vm245_vm0, %v356_v33 }
  0xa5   : > { %584 = vst.msk [vmem:[#allocation2 + $0xf8] sm:$0xff] %vm245_vm0, %v496_v34  ;;  %2483 = vmatmul.msk.f32.gmra.mxu0 %vm245_vm0, %v230_v35  ;;  %2515 = vmatmul.msk.f32.gmra.mxu1 %vm245_vm0, %v230_v35 }
  0xa6   : > { %2547 = vmatmul.msk.f32.gmra.mxu2 %vm245_vm0, %v230_v35  ;;  %2579 = vmatmul.msk.f32.gmra.mxu3 %vm245_vm0, %v230_v35 }
  0xa9   : > { %v636_v36 = vpop.f32.mrf.mxu2  ;;  %v776_v37 = vpop.f32.mrf.mxu3 }
  0xaa   : > { %724 = vst.msk [vmem:[#allocation2 + $0x1e8] sm:$0xff] %vm245_vm0, %v636_v36  ;;  %v359_v38 = vpop.f32.mrf.mxu0  ;;  %v499_v39 = vpop.f32.mrf.mxu1  ;;  %v893_v36 = vld [vmem:[#allocation2] sm:$0xff] }
  0xab   : > { %864 = vst.msk [vmem:[#allocation2 + $0x2d8] sm:$0xff] %vm245_vm0, %v776_v37  ;;  %v953_v37 = vld [vmem:[#allocation2 + $0x1e0] sm:$0xff] }
  0xac   : > { %445 = vst.msk [vmem:[#allocation2 + $0x10] sm:$0xff] %vm245_vm0, %v359_v38 }
  0xad   : > { %585 = vst.msk [vmem:[#allocation2 + $0x100] sm:$0xff] %vm245_vm0, %v499_v39  ;;  %2484 = vmatmul.msk.f32.gmra.mxu0 %vm245_vm0, %v231_v40  ;;  %2516 = vmatmul.msk.f32.gmra.mxu1 %vm245_vm0, %v231_v40 }
  0xae   : > { %2548 = vmatmul.msk.f32.gmra.mxu2 %vm245_vm0, %v231_v40  ;;  %2580 = vmatmul.msk.f32.gmra.mxu3 %vm245_vm0, %v231_v40 }
  0xb1   : > { %v639_v41 = vpop.f32.mrf.mxu2  ;;  %v779_v42 = vpop.f32.mrf.mxu3 }
  0xb2   : > { %725 = vst.msk [vmem:[#allocation2 + $0x1f0] sm:$0xff] %vm245_vm0, %v639_v41  ;;  %v362_v43 = vpop.f32.mrf.mxu0  ;;  %v502_v44 = vpop.f32.mrf.mxu1 }
  0xb3   : > { %865 = vst.msk [vmem:[#allocation2 + $0x2e0] sm:$0xff] %vm245_vm0, %v779_v42  ;;  %v894_v42 = vld [vmem:[#allocation2 + $0x8] sm:$0xff] }
  0xb4   : > { %446 = vst.msk [vmem:[#allocation2 + $0x18] sm:$0xff] %vm245_vm0, %v362_v43  ;;  %v954_v43 = vld [vmem:[#allocation2 + $0x1e8] sm:$0xff] }
  0xb5   : > { %586 = vst.msk [vmem:[#allocation2 + $0x108] sm:$0xff] %vm245_vm0, %v502_v44  ;;  %2485 = vmatmul.msk.f32.gmra.mxu0 %vm245_vm0, %v232_v45  ;;  %2517 = vmatmul.msk.f32.gmra.mxu1 %vm245_vm0, %v232_v45 }
  0xb6   : > { %2549 = vmatmul.msk.f32.gmra.mxu2 %vm245_vm0, %v232_v45  ;;  %2581 = vmatmul.msk.f32.gmra.mxu3 %vm245_vm0, %v232_v45 }
  0xb9   : > { %v642_v46 = vpop.f32.mrf.mxu2  ;;  %v782_v47 = vpop.f32.mrf.mxu3 }
  0xba   : > { %726 = vst.msk [vmem:[#allocation2 + $0x1f8] sm:$0xff] %vm245_vm0, %v642_v46  ;;  %v365_v48 = vpop.f32.mrf.mxu0  ;;  %v505_v49 = vpop.f32.mrf.mxu1 }
  0xbb   : > { %866 = vst.msk [vmem:[#allocation2 + $0x2e8] sm:$0xff] %vm245_vm0, %v782_v47 }
  0xbc   : > { %447 = vst.msk [vmem:[#allocation2 + $0x20] sm:$0xff] %vm245_vm0, %v365_v48  ;;  %v895_v48 = vld [vmem:[#allocation2 + $0x10] sm:$0xff] }
  0xbd   : > { %587 = vst.msk [vmem:[#allocation2 + $0x110] sm:$0xff] %vm245_vm0, %v505_v49  ;;  %2486 = vmatmul.msk.f32.gmra.mxu0 %vm245_vm0, %v233_v50  ;;  %2518 = vmatmul.msk.f32.gmra.mxu1 %vm245_vm0, %v233_v50  ;;  %v955_v49 = vld [vmem:[#allocation2 + $0x1f0] sm:$0xff] }
  0xbe   : > { %2550 = vmatmul.msk.f32.gmra.mxu2 %vm245_vm0, %v233_v50  ;;  %2582 = vmatmul.msk.f32.gmra.mxu3 %vm245_vm0, %v233_v50 }
  0xc1   : > { %v645_v51 = vpop.f32.mrf.mxu2  ;;  %v785_v52 = vpop.f32.mrf.mxu3 }
  0xc2   : > { %727 = vst.msk [vmem:[#allocation2 + $0x200] sm:$0xff] %vm245_vm0, %v645_v51  ;;  %v368_v53 = vpop.f32.mrf.mxu0  ;;  %v508_v54 = vpop.f32.mrf.mxu1 }
  0xc3   : > { %867 = vst.msk [vmem:[#allocation2 + $0x2f0] sm:$0xff] %vm245_vm0, %v785_v52 }
  0xc4   : > { %448 = vst.msk [vmem:[#allocation2 + $0x28] sm:$0xff] %vm245_vm0, %v368_v53 }
  0xc5   : > { %588 = vst.msk [vmem:[#allocation2 + $0x118] sm:$0xff] %vm245_vm0, %v508_v54  ;;  %2487 = vmatmul.msk.f32.gmra.mxu0 %vm245_vm0, %v234_v55  ;;  %2519 = vmatmul.msk.f32.gmra.mxu1 %vm245_vm0, %v234_v55  ;;  %v896_v54 = vld [vmem:[#allocation2 + $0x18] sm:$0xff] }
  0xc6   : > { %2551 = vmatmul.msk.f32.gmra.mxu2 %vm245_vm0, %v234_v55  ;;  %2583 = vmatmul.msk.f32.gmra.mxu3 %vm245_vm0, %v234_v55  ;;  %v956_v55 = vld [vmem:[#allocation2 + $0x1f8] sm:$0xff] }
  0xc9   : > { %v648_v56 = vpop.f32.mrf.mxu2  ;;  %v788_v57 = vpop.f32.mrf.mxu3 }
  0xca   : > { %728 = vst.msk [vmem:[#allocation2 + $0x208] sm:$0xff] %vm245_vm0, %v648_v56  ;;  %v371_v58 = vpop.f32.mrf.mxu0  ;;  %v511_v59 = vpop.f32.mrf.mxu1 }
  0xcb   : > { %868 = vst.msk [vmem:[#allocation2 + $0x2f8] sm:$0xff] %vm245_vm0, %v788_v57 }
  0xcc   : > { %449 = vst.msk [vmem:[#allocation2 + $0x30] sm:$0xff] %vm245_vm0, %v371_v58 }
  0xcd   : > { %589 = vst.msk [vmem:[#allocation2 + $0x120] sm:$0xff] %vm245_vm0, %v511_v59  ;;  %2488 = vmatmul.msk.f32.gmra.mxu0 %vm245_vm0, %v235_v60  ;;  %2520 = vmatmul.msk.f32.gmra.mxu1 %vm245_vm0, %v235_v60 }
  0xce   : > { %2552 = vmatmul.msk.f32.gmra.mxu2 %vm245_vm0, %v235_v60  ;;  %2584 = vmatmul.msk.f32.gmra.mxu3 %vm245_vm0, %v235_v60  ;;  %v897_v60 = vld [vmem:[#allocation2 + $0x20] sm:$0xff] }
  0xd1   : > { %v651_v61 = vpop.f32.mrf.mxu2  ;;  %v791_v62 = vpop.f32.mrf.mxu3 }
  0xd2   : > { %729 = vst.msk [vmem:[#allocation2 + $0x210] sm:$0xff] %vm245_vm0, %v651_v61  ;;  %v374_v63 = vpop.f32.mrf.mxu0  ;;  %v514_v0 = vpop.f32.mrf.mxu1  ;;  %v957_v61 = vld [vmem:[#allocation2 + $0x200] sm:$0xff] }
  0xd3   : > { %869 = vst.msk [vmem:[#allocation2 + $0x300] sm:$0xff] %vm245_vm0, %v791_v62 }
  0xd4   : > { %450 = vst.msk [vmem:[#allocation2 + $0x38] sm:$0xff] %vm245_vm0, %v374_v63 }
  0xd5   : > { %590 = vst.msk [vmem:[#allocation2 + $0x128] sm:$0xff] %vm245_vm0, %v514_v0  ;;  %2489 = vmatmul.msk.f32.gmra.mxu0 %vm245_vm0, %v236_v1  ;;  %2521 = vmatmul.msk.f32.gmra.mxu1 %vm245_vm0, %v236_v1 }
  0xd6   : > { %2553 = vmatmul.msk.f32.gmra.mxu2 %vm245_vm0, %v236_v1  ;;  %2585 = vmatmul.msk.f32.gmra.mxu3 %vm245_vm0, %v236_v1 }
  0xd9   : > { %v654_v2 = vpop.f32.mrf.mxu2  ;;  %v794_v3 = vpop.f32.mrf.mxu3 }
  0xda   : > { %730 = vst.msk [vmem:[#allocation2 + $0x218] sm:$0xff] %vm245_vm0, %v654_v2  ;;  %v377_v4 = vpop.f32.mrf.mxu0  ;;  %v517_v5 = vpop.f32.mrf.mxu1  ;;  %v898_v2 = vld [vmem:[#allocation2 + $0x28] sm:$0xff] }
  0xdb   : > { %870 = vst.msk [vmem:[#allocation2 + $0x308] sm:$0xff] %vm245_vm0, %v794_v3  ;;  %v958_v3 = vld [vmem:[#allocation2 + $0x208] sm:$0xff] }
  0xdc   : > { %451 = vst.msk [vmem:[#allocation2 + $0x40] sm:$0xff] %vm245_vm0, %v377_v4 }
  0xdd   : > { %591 = vst.msk [vmem:[#allocation2 + $0x130] sm:$0xff] %vm245_vm0, %v517_v5  ;;  %2490 = vmatmul.msk.f32.gmra.mxu0 %vm245_vm0, %v237_v6  ;;  %2522 = vmatmul.msk.f32.gmra.mxu1 %vm245_vm0, %v237_v6 }
  0xde   : > { %2554 = vmatmul.msk.f32.gmra.mxu2 %vm245_vm0, %v237_v6  ;;  %2586 = vmatmul.msk.f32.gmra.mxu3 %vm245_vm0, %v237_v6 }
  0xe1   : > { %v657_v7 = vpop.f32.mrf.mxu2  ;;  %v797_v8 = vpop.f32.mrf.mxu3 }
  0xe2   : > { %731 = vst.msk [vmem:[#allocation2 + $0x220] sm:$0xff] %vm245_vm0, %v657_v7  ;;  %v380_v9 = vpop.f32.mrf.mxu0  ;;  %v520_v10 = vpop.f32.mrf.mxu1 }
  0xe3   : > { %871 = vst.msk [vmem:[#allocation2 + $0x310] sm:$0xff] %vm245_vm0, %v797_v8  ;;  %v899_v8 = vld [vmem:[#allocation2 + $0x30] sm:$0xff] }
  0xe4   : > { %452 = vst.msk [vmem:[#allocation2 + $0x48] sm:$0xff] %vm245_vm0, %v380_v9  ;;  %v959_v9 = vld [vmem:[#allocation2 + $0x210] sm:$0xff] }
  0xe5   : > { %592 = vst.msk [vmem:[#allocation2 + $0x138] sm:$0xff] %vm245_vm0, %v520_v10  ;;  %2491 = vmatmul.msk.f32.gmra.mxu0 %vm245_vm0, %v238_v11  ;;  %2523 = vmatmul.msk.f32.gmra.mxu1 %vm245_vm0, %v238_v11 }
  0xe6   : > { %2555 = vmatmul.msk.f32.gmra.mxu2 %vm245_vm0, %v238_v11  ;;  %2587 = vmatmul.msk.f32.gmra.mxu3 %vm245_vm0, %v238_v11 }
  0xe9   : > { %v660_v12 = vpop.f32.mrf.mxu2  ;;  %v800_v13 = vpop.f32.mrf.mxu3 }
  0xea   : > { %732 = vst.msk [vmem:[#allocation2 + $0x228] sm:$0xff] %vm245_vm0, %v660_v12  ;;  %v383_v14 = vpop.f32.mrf.mxu0  ;;  %v523_v15 = vpop.f32.mrf.mxu1 }
  0xeb   : > { %872 = vst.msk [vmem:[#allocation2 + $0x318] sm:$0xff] %vm245_vm0, %v800_v13 }
  0xec   : > { %453 = vst.msk [vmem:[#allocation2 + $0x50] sm:$0xff] %vm245_vm0, %v383_v14  ;;  %v900_v14 = vld [vmem:[#allocation2 + $0x38] sm:$0xff] }
  0xed   : > { %593 = vst.msk [vmem:[#allocation2 + $0x140] sm:$0xff] %vm245_vm0, %v523_v15  ;;  %2492 = vmatmul.msk.f32.gmra.mxu0 %vm245_vm0, %v239_v16  ;;  %2524 = vmatmul.msk.f32.gmra.mxu1 %vm245_vm0, %v239_v16  ;;  %v960_v15 = vld [vmem:[#allocation2 + $0x218] sm:$0xff] }
  0xee   : > { %2556 = vmatmul.msk.f32.gmra.mxu2 %vm245_vm0, %v239_v16  ;;  %2588 = vmatmul.msk.f32.gmra.mxu3 %vm245_vm0, %v239_v16 }
  0xf1   : > { %v663_v17 = vpop.f32.mrf.mxu2  ;;  %v803_v18 = vpop.f32.mrf.mxu3 }
  0xf2   : > { %733 = vst.msk [vmem:[#allocation2 + $0x230] sm:$0xff] %vm245_vm0, %v663_v17  ;;  %v386_v19 = vpop.f32.mrf.mxu0  ;;  %v526_v20 = vpop.f32.mrf.mxu1 }
  0xf3   : > { %873 = vst.msk [vmem:[#allocation2 + $0x320] sm:$0xff] %vm245_vm0, %v803_v18 }
  0xf4   : > { %454 = vst.msk [vmem:[#allocation2 + $0x58] sm:$0xff] %vm245_vm0, %v386_v19 }
  0xf5   : > { %594 = vst.msk [vmem:[#allocation2 + $0x148] sm:$0xff] %vm245_vm0, %v526_v20  ;;  %2493 = vmatmul.msk.f32.gmra.mxu0 %vm245_vm0, %v240_v21  ;;  %2525 = vmatmul.msk.f32.gmra.mxu1 %vm245_vm0, %v240_v21  ;;  %v901_v20 = vld [vmem:[#allocation2 + $0x40] sm:$0xff] }
  0xf6   : > { %2557 = vmatmul.msk.f32.gmra.mxu2 %vm245_vm0, %v240_v21  ;;  %2589 = vmatmul.msk.f32.gmra.mxu3 %vm245_vm0, %v240_v21  ;;  %v961_v21 = vld [vmem:[#allocation2 + $0x220] sm:$0xff] }
  0xf9   : > { %v666_v22 = vpop.f32.mrf.mxu2  ;;  %v806_v23 = vpop.f32.mrf.mxu3 }
  0xfa   : > { %734 = vst.msk [vmem:[#allocation2 + $0x238] sm:$0xff] %vm245_vm0, %v666_v22  ;;  %v389_v24 = vpop.f32.mrf.mxu0  ;;  %v529_v25 = vpop.f32.mrf.mxu1 }
  0xfb   : > { %874 = vst.msk [vmem:[#allocation2 + $0x328] sm:$0xff] %vm245_vm0, %v806_v23 }
  0xfc   : > { %455 = vst.msk [vmem:[#allocation2 + $0x60] sm:$0xff] %vm245_vm0, %v389_v24 }
  0xfd   : > { %595 = vst.msk [vmem:[#allocation2 + $0x150] sm:$0xff] %vm245_vm0, %v529_v25  ;;  %2494 = vmatmul.msk.f32.gmra.mxu0 %vm245_vm0, %v241_v26  ;;  %2526 = vmatmul.msk.f32.gmra.mxu1 %vm245_vm0, %v241_v26 }
  0xfe   : > { %2558 = vmatmul.msk.f32.gmra.mxu2 %vm245_vm0, %v241_v26  ;;  %2590 = vmatmul.msk.f32.gmra.mxu3 %vm245_vm0, %v241_v26  ;;  %v902_v26 = vld [vmem:[#allocation2 + $0x48] sm:$0xff] }
 0x101   : > { %v669_v27 = vpop.f32.mrf.mxu2  ;;  %v809_v28 = vpop.f32.mrf.mxu3 }
 0x102   : > { %735 = vst.msk [vmem:[#allocation2 + $0x240] sm:$0xff] %vm245_vm0, %v669_v27  ;;  %v392_v29 = vpop.f32.mrf.mxu0  ;;  %v532_v30 = vpop.f32.mrf.mxu1  ;;  %v962_v27 = vld [vmem:[#allocation2 + $0x228] sm:$0xff] }
 0x103   : > { %875 = vst.msk [vmem:[#allocation2 + $0x330] sm:$0xff] %vm245_vm0, %v809_v28 }
 0x104   : > { %456 = vst.msk [vmem:[#allocation2 + $0x68] sm:$0xff] %vm245_vm0, %v392_v29 }
 0x105   : > { %596 = vst.msk [vmem:[#allocation2 + $0x158] sm:$0xff] %vm245_vm0, %v532_v30  ;;  %2495 = vmatmul.msk.f32.gmra.mxu0 %vm245_vm0, %v242_v31  ;;  %2527 = vmatmul.msk.f32.gmra.mxu1 %vm245_vm0, %v242_v31 }
 0x106   : > { %2559 = vmatmul.msk.f32.gmra.mxu2 %vm245_vm0, %v242_v31  ;;  %2591 = vmatmul.msk.f32.gmra.mxu3 %vm245_vm0, %v242_v31 }
 0x109   : > { %v672_v32 = vpop.f32.mrf.mxu2  ;;  %v812_v33 = vpop.f32.mrf.mxu3 }
 0x10a   : > { %736 = vst.msk [vmem:[#allocation2 + $0x248] sm:$0xff] %vm245_vm0, %v672_v32  ;;  %v395_v34 = vpop.f32.mrf.mxu0  ;;  %v535_v35 = vpop.f32.mrf.mxu1  ;;  %v903_v32 = vld [vmem:[#allocation2 + $0x50] sm:$0xff] }
 0x10b   : > { %876 = vst.msk [vmem:[#allocation2 + $0x338] sm:$0xff] %vm245_vm0, %v812_v33  ;;  %v963_v33 = vld [vmem:[#allocation2 + $0x230] sm:$0xff] }
 0x10c   : > { %457 = vst.msk [vmem:[#allocation2 + $0x70] sm:$0xff] %vm245_vm0, %v395_v34 }
 0x10d   : > { %597 = vst.msk [vmem:[#allocation2 + $0x160] sm:$0xff] %vm245_vm0, %v535_v35  ;;  %2592 = vmatmul.msk.f32.vlgmr.msrb.gmra.mxu0 %vm245_vm0, %v893_v36  ;;  %2712 = vmatmul.msk.f32.vlgmr.msrb.gmra.mxu1 %vm245_vm0, %v893_v36 }
 0x10e   : > { %2652 = vmatmul.msk.f32.vlgmr.msrb.gmra.mxu2 %vm245_vm0, %v953_v37  ;;  %2772 = vmatmul.msk.f32.vlgmr.msrb.gmra.mxu3 %vm245_vm0, %v953_v37 }
 0x111   : > { %v675_v38 = vpop.f32.mrf.mxu2  ;;  %v815_v39 = vpop.f32.mrf.mxu3 }
 0x112   : > { %737 = vst.msk [vmem:[#allocation2 + $0x250] sm:$0xff] %vm245_vm0, %v675_v38  ;;  %v398_v40 = vpop.f32.mrf.mxu0  ;;  %v538_v41 = vpop.f32.mrf.mxu1  ;;  %v904_v38 = vld [vmem:[#allocation2 + $0x58] sm:$0xff] }
 0x113   : > { %877 = vst.msk [vmem:[#allocation2 + $0x340] sm:$0xff] %vm245_vm0, %v815_v39  ;;  %v964_v39 = vld [vmem:[#allocation2 + $0x238] sm:$0xff] }
 0x114   : > { %458 = vst.msk [vmem:[#allocation2 + $0x78] sm:$0xff] %vm245_vm0, %v398_v40 }
 0x115   : > { %598 = vst.msk [vmem:[#allocation2 + $0x168] sm:$0xff] %vm245_vm0, %v538_v41  ;;  %2593 = vmatmul.msk.f32.gmra.mxu0 %vm245_vm0, %v894_v42  ;;  %2713 = vmatmul.msk.f32.gmra.mxu1 %vm245_vm0, %v894_v42 }
 0x116   : > { %2653 = vmatmul.msk.f32.gmra.mxu2 %vm245_vm0, %v954_v43  ;;  %2773 = vmatmul.msk.f32.gmra.mxu3 %vm245_vm0, %v954_v43 }
 0x119   : > { %v678_v44 = vpop.f32.mrf.mxu2  ;;  %v818_v45 = vpop.f32.mrf.mxu3 }
 0x11a   : > { %738 = vst.msk [vmem:[#allocation2 + $0x258] sm:$0xff] %vm245_vm0, %v678_v44  ;;  %v401_v46 = vpop.f32.mrf.mxu0  ;;  %v541_v47 = vpop.f32.mrf.mxu1  ;;  %v905_v44 = vld [vmem:[#allocation2 + $0x60] sm:$0xff] }
 0x11b   : > { %878 = vst.msk [vmem:[#allocation2 + $0x348] sm:$0xff] %vm245_vm0, %v818_v45  ;;  %v965_v45 = vld [vmem:[#allocation2 + $0x240] sm:$0xff] }
 0x11c   : > { %459 = vst.msk [vmem:[#allocation2 + $0x80] sm:$0xff] %vm245_vm0, %v401_v46 }
 0x11d   : > { %599 = vst.msk [vmem:[#allocation2 + $0x170] sm:$0xff] %vm245_vm0, %v541_v47  ;;  %2594 = vmatmul.msk.f32.gmra.mxu0 %vm245_vm0, %v895_v48  ;;  %2714 = vmatmul.msk.f32.gmra.mxu1 %vm245_vm0, %v895_v48 }
 0x11e   : > { %2654 = vmatmul.msk.f32.gmra.mxu2 %vm245_vm0, %v955_v49  ;;  %2774 = vmatmul.msk.f32.gmra.mxu3 %vm245_vm0, %v955_v49 }
 0x121   : > { %v681_v50 = vpop.f32.mrf.mxu2  ;;  %v821_v51 = vpop.f32.mrf.mxu3 }
 0x122   : > { %739 = vst.msk [vmem:[#allocation2 + $0x260] sm:$0xff] %vm245_vm0, %v681_v50  ;;  %v404_v52 = vpop.f32.mrf.mxu0  ;;  %v544_v53 = vpop.f32.mrf.mxu1  ;;  %v906_v50 = vld [vmem:[#allocation2 + $0x68] sm:$0xff] }
 0x123   : > { %879 = vst.msk [vmem:[#allocation2 + $0x350] sm:$0xff] %vm245_vm0, %v821_v51  ;;  %v966_v51 = vld [vmem:[#allocation2 + $0x248] sm:$0xff] }
 0x124   : > { %460 = vst.msk [vmem:[#allocation2 + $0x88] sm:$0xff] %vm245_vm0, %v404_v52 }
 0x125   : > { %600 = vst.msk [vmem:[#allocation2 + $0x178] sm:$0xff] %vm245_vm0, %v544_v53  ;;  %2595 = vmatmul.msk.f32.gmra.mxu0 %vm245_vm0, %v896_v54  ;;  %2715 = vmatmul.msk.f32.gmra.mxu1 %vm245_vm0, %v896_v54 }
 0x126   : > { %2655 = vmatmul.msk.f32.gmra.mxu2 %vm245_vm0, %v956_v55  ;;  %2775 = vmatmul.msk.f32.gmra.mxu3 %vm245_vm0, %v956_v55 }
 0x129   : > { %v684_v56 = vpop.f32.mrf.mxu2  ;;  %v824_v57 = vpop.f32.mrf.mxu3 }
 0x12a   : > { %740 = vst.msk [vmem:[#allocation2 + $0x268] sm:$0xff] %vm245_vm0, %v684_v56  ;;  %v407_v58 = vpop.f32.mrf.mxu0  ;;  %v547_v59 = vpop.f32.mrf.mxu1  ;;  %v907_v56 = vld [vmem:[#allocation2 + $0x70] sm:$0xff] }
 0x12b   : > { %880 = vst.msk [vmem:[#allocation2 + $0x358] sm:$0xff] %vm245_vm0, %v824_v57  ;;  %v967_v57 = vld [vmem:[#allocation2 + $0x250] sm:$0xff] }
 0x12c   : > { %461 = vst.msk [vmem:[#allocation2 + $0x90] sm:$0xff] %vm245_vm0, %v407_v58 }
 0x12d   : > { %601 = vst.msk [vmem:[#allocation2 + $0x180] sm:$0xff] %vm245_vm0, %v547_v59  ;;  %2596 = vmatmul.msk.f32.gmra.mxu0 %vm245_vm0, %v897_v60  ;;  %2716 = vmatmul.msk.f32.gmra.mxu1 %vm245_vm0, %v897_v60 }
 0x12e   : > { %2656 = vmatmul.msk.f32.gmra.mxu2 %vm245_vm0, %v957_v61  ;;  %2776 = vmatmul.msk.f32.gmra.mxu3 %vm245_vm0, %v957_v61 }
 0x131   : > { %v687_v62 = vpop.f32.mrf.mxu2  ;;  %v827_v63 = vpop.f32.mrf.mxu3 }
 0x132   : > { %741 = vst.msk [vmem:[#allocation2 + $0x270] sm:$0xff] %vm245_vm0, %v687_v62  ;;  %v410_v0 = vpop.f32.mrf.mxu0  ;;  %v550_v1 = vpop.f32.mrf.mxu1  ;;  %v908_v62 = vld [vmem:[#allocation2 + $0x78] sm:$0xff] }
 0x133   : > { %881 = vst.msk [vmem:[#allocation2 + $0x360] sm:$0xff] %vm245_vm0, %v827_v63  ;;  %v968_v63 = vld [vmem:[#allocation2 + $0x258] sm:$0xff] }
 0x134   : > { %462 = vst.msk [vmem:[#allocation2 + $0x98] sm:$0xff] %vm245_vm0, %v410_v0 }
 0x135   : > { %602 = vst.msk [vmem:[#allocation2 + $0x188] sm:$0xff] %vm245_vm0, %v550_v1  ;;  %2597 = vmatmul.msk.f32.gmra.mxu0 %vm245_vm0, %v898_v2  ;;  %2717 = vmatmul.msk.f32.gmra.mxu1 %vm245_vm0, %v898_v2 }
 0x136   : > { %2657 = vmatmul.msk.f32.gmra.mxu2 %vm245_vm0, %v958_v3  ;;  %2777 = vmatmul.msk.f32.gmra.mxu3 %vm245_vm0, %v958_v3 }
 0x139   : > { %v690_v4 = vpop.f32.mrf.mxu2  ;;  %v830_v5 = vpop.f32.mrf.mxu3 }
 0x13a   : > { %742 = vst.msk [vmem:[#allocation2 + $0x278] sm:$0xff] %vm245_vm0, %v690_v4  ;;  %v413_v6 = vpop.f32.mrf.mxu0  ;;  %v553_v7 = vpop.f32.mrf.mxu1  ;;  %v909_v4 = vld [vmem:[#allocation2 + $0x80] sm:$0xff] }
 0x13b   : > { %882 = vst.msk [vmem:[#allocation2 + $0x368] sm:$0xff] %vm245_vm0, %v830_v5  ;;  %v969_v5 = vld [vmem:[#allocation2 + $0x260] sm:$0xff] }
 0x13c   : > { %463 = vst.msk [vmem:[#allocation2 + $0xa0] sm:$0xff] %vm245_vm0, %v413_v6 }
 0x13d   : > { %603 = vst.msk [vmem:[#allocation2 + $0x190] sm:$0xff] %vm245_vm0, %v553_v7  ;;  %2598 = vmatmul.msk.f32.gmra.mxu0 %vm245_vm0, %v899_v8  ;;  %2718 = vmatmul.msk.f32.gmra.mxu1 %vm245_vm0, %v899_v8 }
 0x13e   : > { %2658 = vmatmul.msk.f32.gmra.mxu2 %vm245_vm0, %v959_v9  ;;  %2778 = vmatmul.msk.f32.gmra.mxu3 %vm245_vm0, %v959_v9 }
 0x141   : > { %v693_v10 = vpop.f32.mrf.mxu2  ;;  %v833_v11 = vpop.f32.mrf.mxu3 }
 0x142   : > { %743 = vst.msk [vmem:[#allocation2 + $0x280] sm:$0xff] %vm245_vm0, %v693_v10  ;;  %v416_v12 = vpop.f32.mrf.mxu0  ;;  %v556_v13 = vpop.f32.mrf.mxu1  ;;  %v910_v10 = vld [vmem:[#allocation2 + $0x88] sm:$0xff] }
 0x143   : > { %883 = vst.msk [vmem:[#allocation2 + $0x370] sm:$0xff] %vm245_vm0, %v833_v11  ;;  %v970_v11 = vld [vmem:[#allocation2 + $0x268] sm:$0xff] }
 0x144   : > { %464 = vst.msk [vmem:[#allocation2 + $0xa8] sm:$0xff] %vm245_vm0, %v416_v12 }
 0x145   : > { %604 = vst.msk [vmem:[#allocation2 + $0x198] sm:$0xff] %vm245_vm0, %v556_v13  ;;  %2599 = vmatmul.msk.f32.gmra.mxu0 %vm245_vm0, %v900_v14  ;;  %2719 = vmatmul.msk.f32.gmra.mxu1 %vm245_vm0, %v900_v14 }
 0x146   : > { %2659 = vmatmul.msk.f32.gmra.mxu2 %vm245_vm0, %v960_v15  ;;  %2779 = vmatmul.msk.f32.gmra.mxu3 %vm245_vm0, %v960_v15 }
 0x149   : > { %v696_v16 = vpop.f32.mrf.mxu2  ;;  %v836_v17 = vpop.f32.mrf.mxu3 }
 0x14a   : > { %744 = vst.msk [vmem:[#allocation2 + $0x288] sm:$0xff] %vm245_vm0, %v696_v16  ;;  %v419_v18 = vpop.f32.mrf.mxu0  ;;  %v559_v19 = vpop.f32.mrf.mxu1  ;;  %v911_v16 = vld [vmem:[#allocation2 + $0x90] sm:$0xff] }
 0x14b   : > { %884 = vst.msk [vmem:[#allocation2 + $0x378] sm:$0xff] %vm245_vm0, %v836_v17  ;;  %v971_v17 = vld [vmem:[#allocation2 + $0x270] sm:$0xff] }
 0x14c   : > { %465 = vst.msk [vmem:[#allocation2 + $0xb0] sm:$0xff] %vm245_vm0, %v419_v18 }
 0x14d   : > { %605 = vst.msk [vmem:[#allocation2 + $0x1a0] sm:$0xff] %vm245_vm0, %v559_v19  ;;  %2600 = vmatmul.msk.f32.gmra.mxu0 %vm245_vm0, %v901_v20  ;;  %2720 = vmatmul.msk.f32.gmra.mxu1 %vm245_vm0, %v901_v20 }
 0x14e   : > { %2660 = vmatmul.msk.f32.gmra.mxu2 %vm245_vm0, %v961_v21  ;;  %2780 = vmatmul.msk.f32.gmra.mxu3 %vm245_vm0, %v961_v21 }
 0x151   : > { %v699_v22 = vpop.f32.mrf.mxu2  ;;  %v839_v23 = vpop.f32.mrf.mxu3 }
 0x152   : > { %745 = vst.msk [vmem:[#allocation2 + $0x290] sm:$0xff] %vm245_vm0, %v699_v22  ;;  %v422_v24 = vpop.f32.mrf.mxu0  ;;  %v562_v25 = vpop.f32.mrf.mxu1  ;;  %v912_v22 = vld [vmem:[#allocation2 + $0x98] sm:$0xff] }
 0x153   : > { %885 = vst.msk [vmem:[#allocation2 + $0x380] sm:$0xff] %vm245_vm0, %v839_v23  ;;  %v972_v23 = vld [vmem:[#allocation2 + $0x278] sm:$0xff] }
 0x154   : > { %466 = vst.msk [vmem:[#allocation2 + $0xb8] sm:$0xff] %vm245_vm0, %v422_v24 }
 0x155   : > { %606 = vst.msk [vmem:[#allocation2 + $0x1a8] sm:$0xff] %vm245_vm0, %v562_v25  ;;  %2601 = vmatmul.msk.f32.gmra.mxu0 %vm245_vm0, %v902_v26  ;;  %2721 = vmatmul.msk.f32.gmra.mxu1 %vm245_vm0, %v902_v26 }
 0x156   : > { %2661 = vmatmul.msk.f32.gmra.mxu2 %vm245_vm0, %v962_v27  ;;  %2781 = vmatmul.msk.f32.gmra.mxu3 %vm245_vm0, %v962_v27 }
 0x159   : > { %v702_v28 = vpop.f32.mrf.mxu2  ;;  %v842_v29 = vpop.f32.mrf.mxu3 }
 0x15a   : > { %746 = vst.msk [vmem:[#allocation2 + $0x298] sm:$0xff] %vm245_vm0, %v702_v28  ;;  %v425_v30 = vpop.f32.mrf.mxu0  ;;  %v565_v31 = vpop.f32.mrf.mxu1  ;;  %v913_v28 = vld [vmem:[#allocation2 + $0xa0] sm:$0xff] }
 0x15b   : > { %886 = vst.msk [vmem:[#allocation2 + $0x388] sm:$0xff] %vm245_vm0, %v842_v29  ;;  %v973_v29 = vld [vmem:[#allocation2 + $0x280] sm:$0xff] }
 0x15c   : > { %467 = vst.msk [vmem:[#allocation2 + $0xc0] sm:$0xff] %vm245_vm0, %v425_v30 }
 0x15d   : > { %607 = vst.msk [vmem:[#allocation2 + $0x1b0] sm:$0xff] %vm245_vm0, %v565_v31  ;;  %2602 = vmatmul.msk.f32.gmra.mxu0 %vm245_vm0, %v903_v32  ;;  %2722 = vmatmul.msk.f32.gmra.mxu1 %vm245_vm0, %v903_v32 }
 0x15e   : > { %2662 = vmatmul.msk.f32.gmra.mxu2 %vm245_vm0, %v963_v33  ;;  %2782 = vmatmul.msk.f32.gmra.mxu3 %vm245_vm0, %v963_v33 }
 0x161   : > { %v705_v34 = vpop.f32.mrf.mxu2  ;;  %v845_v35 = vpop.f32.mrf.mxu3 }
 0x162   : > { %747 = vst.msk [vmem:[#allocation2 + $0x2a0] sm:$0xff] %vm245_vm0, %v705_v34  ;;  %v428_v36 = vpop.f32.mrf.mxu0  ;;  %v568_v37 = vpop.f32.mrf.mxu1  ;;  %v914_v34 = vld [vmem:[#allocation2 + $0xa8] sm:$0xff] }
 0x163   : > { %887 = vst.msk [vmem:[#allocation2 + $0x390] sm:$0xff] %vm245_vm0, %v845_v35  ;;  %v974_v35 = vld [vmem:[#allocation2 + $0x288] sm:$0xff] }
 0x164   : > { %468 = vst.msk [vmem:[#allocation2 + $0xc8] sm:$0xff] %vm245_vm0, %v428_v36 }
 0x165   : > { %608 = vst.msk [vmem:[#allocation2 + $0x1b8] sm:$0xff] %vm245_vm0, %v568_v37  ;;  %2603 = vmatmul.msk.f32.gmra.mxu0 %vm245_vm0, %v904_v38  ;;  %2723 = vmatmul.msk.f32.gmra.mxu1 %vm245_vm0, %v904_v38 }
 0x166   : > { %2663 = vmatmul.msk.f32.gmra.mxu2 %vm245_vm0, %v964_v39  ;;  %2783 = vmatmul.msk.f32.gmra.mxu3 %vm245_vm0, %v964_v39 }
 0x169   : > { %v708_v40 = vpop.f32.mrf.mxu2  ;;  %v848_v41 = vpop.f32.mrf.mxu3 }
 0x16a   : > { %748 = vst.msk [vmem:[#allocation2 + $0x2a8] sm:$0xff] %vm245_vm0, %v708_v40  ;;  %v431_v42 = vpop.f32.mrf.mxu0  ;;  %v571_v43 = vpop.f32.mrf.mxu1  ;;  %v915_v40 = vld [vmem:[#allocation2 + $0xb0] sm:$0xff] }
 0x16b   : > { %888 = vst.msk [vmem:[#allocation2 + $0x398] sm:$0xff] %vm245_vm0, %v848_v41  ;;  %v975_v41 = vld [vmem:[#allocation2 + $0x290] sm:$0xff] }
 0x16c   : > { %469 = vst.msk [vmem:[#allocation2 + $0xd0] sm:$0xff] %vm245_vm0, %v431_v42 }
 0x16d   : > { %609 = vst.msk [vmem:[#allocation2 + $0x1c0] sm:$0xff] %vm245_vm0, %v571_v43  ;;  %2604 = vmatmul.msk.f32.gmra.mxu0 %vm245_vm0, %v905_v44  ;;  %2724 = vmatmul.msk.f32.gmra.mxu1 %vm245_vm0, %v905_v44 }
 0x16e   : > { %2664 = vmatmul.msk.f32.gmra.mxu2 %vm245_vm0, %v965_v45  ;;  %2784 = vmatmul.msk.f32.gmra.mxu3 %vm245_vm0, %v965_v45 }
 0x171   : > { %v711_v46 = vpop.f32.mrf.mxu2  ;;  %v851_v47 = vpop.f32.mrf.mxu3 }
 0x172   : > { %749 = vst.msk [vmem:[#allocation2 + $0x2b0] sm:$0xff] %vm245_vm0, %v711_v46  ;;  %v434_v48 = vpop.f32.mrf.mxu0  ;;  %v574_v49 = vpop.f32.mrf.mxu1  ;;  %v916_v46 = vld [vmem:[#allocation2 + $0xb8] sm:$0xff] }
 0x173   : > { %889 = vst.msk [vmem:[#allocation2 + $0x3a0] sm:$0xff] %vm245_vm0, %v851_v47  ;;  %v976_v47 = vld [vmem:[#allocation2 + $0x298] sm:$0xff] }
 0x174   : > { %470 = vst.msk [vmem:[#allocation2 + $0xd8] sm:$0xff] %vm245_vm0, %v434_v48 }
 0x175   : > { %610 = vst.msk [vmem:[#allocation2 + $0x1c8] sm:$0xff] %vm245_vm0, %v574_v49  ;;  %2605 = vmatmul.msk.f32.gmra.mxu0 %vm245_vm0, %v906_v50  ;;  %2725 = vmatmul.msk.f32.gmra.mxu1 %vm245_vm0, %v906_v50 }
 0x176   : > { %2665 = vmatmul.msk.f32.gmra.mxu2 %vm245_vm0, %v966_v51  ;;  %2785 = vmatmul.msk.f32.gmra.mxu3 %vm245_vm0, %v966_v51 }
 0x179   : > { %v714_v52 = vpop.f32.mrf.mxu2  ;;  %v854_v53 = vpop.f32.mrf.mxu3 }
 0x17a   : > { %750 = vst.msk [vmem:[#allocation2 + $0x2b8] sm:$0xff] %vm245_vm0, %v714_v52  ;;  %v437_v54 = vpop.f32.mrf.mxu0  ;;  %v577_v55 = vpop.f32.mrf.mxu1  ;;  %v917_v52 = vld [vmem:[#allocation2 + $0xc0] sm:$0xff] }
 0x17b   : > { %890 = vst.msk [vmem:[#allocation2 + $0x3a8] sm:$0xff] %vm245_vm0, %v854_v53  ;;  %v977_v53 = vld [vmem:[#allocation2 + $0x2a0] sm:$0xff] }
 0x17c   : > { %471 = vst.msk [vmem:[#allocation2 + $0xe0] sm:$0xff] %vm245_vm0, %v437_v54 }
 0x17d   : > { %611 = vst.msk [vmem:[#allocation2 + $0x1d0] sm:$0xff] %vm245_vm0, %v577_v55  ;;  %2606 = vmatmul.msk.f32.gmra.mxu0 %vm245_vm0, %v907_v56  ;;  %2726 = vmatmul.msk.f32.gmra.mxu1 %vm245_vm0, %v907_v56 }
 0x17e   : > { %2666 = vmatmul.msk.f32.gmra.mxu2 %vm245_vm0, %v967_v57  ;;  %2786 = vmatmul.msk.f32.gmra.mxu3 %vm245_vm0, %v967_v57 }
 0x181   : > { %v717_v58 = vpop.f32.mrf.mxu2  ;;  %v857_v59 = vpop.f32.mrf.mxu3 }
 0x182   : > { %751 = vst.msk [vmem:[#allocation2 + $0x2c0] sm:$0xff] %vm245_vm0, %v717_v58  ;;  %v440_v60 = vpop.f32.mrf.mxu0  ;;  %v580_v61 = vpop.f32.mrf.mxu1  ;;  %v918_v58 = vld [vmem:[#allocation2 + $0xc8] sm:$0xff] }
 0x183   : > { %891 = vst.msk [vmem:[#allocation2 + $0x3b0] sm:$0xff] %vm245_vm0, %v857_v59  ;;  %v978_v59 = vld [vmem:[#allocation2 + $0x2a8] sm:$0xff] }
 0x184   : > { %472 = vst.msk [vmem:[#allocation2 + $0xe8] sm:$0xff] %vm245_vm0, %v440_v60 }
 0x185   : > { %612 = vst.msk [vmem:[#allocation2 + $0x1d8] sm:$0xff] %vm245_vm0, %v580_v61  ;;  %2607 = vmatmul.msk.f32.gmra.mxu0 %vm245_vm0, %v908_v62  ;;  %2727 = vmatmul.msk.f32.gmra.mxu1 %vm245_vm0, %v908_v62 }
 0x186   : > { %2667 = vmatmul.msk.f32.gmra.mxu2 %vm245_vm0, %v968_v63  ;;  %2787 = vmatmul.msk.f32.gmra.mxu3 %vm245_vm0, %v968_v63 }
 0x189   : > { %v720_v0 = vpop.f32.mrf.mxu2  ;;  %v860_v1 = vpop.f32.mrf.mxu3 }
 0x18a   : > { %752 = vst.msk [vmem:[#allocation2 + $0x2c8] sm:$0xff] %vm245_vm0, %v720_v0  ;;  %v1394_v2 = vpop.f32.mrf.mxu0  ;;  %v1771_v3 = vpop.f32.mrf.mxu1  ;;  %v919_v0 = vld [vmem:[#allocation2 + $0xd0] sm:$0xff] }
 0x18b   : > { %892 = vst.msk [vmem:[#allocation2 + $0x3b8] sm:$0xff] %vm245_vm0, %v860_v1  ;;  %v979_v1 = vld [vmem:[#allocation2 + $0x2b0] sm:$0xff] }
 0x18c   : > { %2131 = vst [vmem:[%s3323_s11] sm:$0xff] %v1394_v2 }
 0x18d   : > { %2133 = vst.msk [vmem:[%s3323_s11 + $0x8] sm:$0xff] %vm2132_vm1, %v1771_v3  ;;  %2608 = vmatmul.msk.f32.gmra.mxu0 %vm245_vm0, %v909_v4  ;;  %2728 = vmatmul.msk.f32.gmra.mxu1 %vm245_vm0, %v909_v4 }
 0x18e   : > { %2668 = vmatmul.msk.f32.gmra.mxu2 %vm245_vm0, %v969_v5  ;;  %2788 = vmatmul.msk.f32.gmra.mxu3 %vm245_vm0, %v969_v5 }
 0x191   : > { %v1574_v6 = vpop.f32.mrf.mxu2  ;;  %v1951_v7 = vpop.f32.mrf.mxu3 }
 0x192   : > { %2252 = vst [vmem:[%s3323_s11 + $0x3c0] sm:$0xff] %v1574_v6  ;;  %v1397_v8 = vpop.f32.mrf.mxu0  ;;  %v1774_v9 = vpop.f32.mrf.mxu1  ;;  %v920_v6 = vld [vmem:[#allocation2 + $0xd8] sm:$0xff] }
 0x193   : > { %2253 = vst.msk [vmem:[%s3323_s11 + $0x3c8] sm:$0xff] %vm2132_vm1, %v1951_v7  ;;  %v980_v7 = vld [vmem:[#allocation2 + $0x2b8] sm:$0xff] }
 0x194   : > { %2134 = vst [vmem:[%s3323_s11 + $0x10] sm:$0xff] %v1397_v8 }
 0x195   : > { %2135 = vst.msk [vmem:[%s3323_s11 + $0x18] sm:$0xff] %vm2132_vm1, %v1774_v9  ;;  %2609 = vmatmul.msk.f32.gmra.mxu0 %vm245_vm0, %v910_v10  ;;  %2729 = vmatmul.msk.f32.gmra.mxu1 %vm245_vm0, %v910_v10 }
 0x196   : > { %2669 = vmatmul.msk.f32.gmra.mxu2 %vm245_vm0, %v970_v11  ;;  %2789 = vmatmul.msk.f32.gmra.mxu3 %vm245_vm0, %v970_v11 }
 0x199   : > { %v1577_v12 = vpop.f32.mrf.mxu2  ;;  %v1954_v13 = vpop.f32.mrf.mxu3 }
 0x19a   : > { %2254 = vst [vmem:[%s3323_s11 + $0x3d0] sm:$0xff] %v1577_v12  ;;  %v1400_v14 = vpop.f32.mrf.mxu0  ;;  %v1777_v15 = vpop.f32.mrf.mxu1  ;;  %v921_v12 = vld [vmem:[#allocation2 + $0xe0] sm:$0xff] }
 0x19b   : > { %2255 = vst.msk [vmem:[%s3323_s11 + $0x3d8] sm:$0xff] %vm2132_vm1, %v1954_v13  ;;  %v981_v13 = vld [vmem:[#allocation2 + $0x2c0] sm:$0xff] }
 0x19c   : > { %2136 = vst [vmem:[%s3323_s11 + $0x20] sm:$0xff] %v1400_v14 }
 0x19d   : > { %2137 = vst.msk [vmem:[%s3323_s11 + $0x28] sm:$0xff] %vm2132_vm1, %v1777_v15  ;;  %2610 = vmatmul.msk.f32.gmra.mxu0 %vm245_vm0, %v911_v16  ;;  %2730 = vmatmul.msk.f32.gmra.mxu1 %vm245_vm0, %v911_v16 }
 0x19e   : > { %2670 = vmatmul.msk.f32.gmra.mxu2 %vm245_vm0, %v971_v17  ;;  %2790 = vmatmul.msk.f32.gmra.mxu3 %vm245_vm0, %v971_v17 }
 0x1a1   : > { %v1580_v18 = vpop.f32.mrf.mxu2  ;;  %v1957_v19 = vpop.f32.mrf.mxu3 }
 0x1a2   : > { %2256 = vst [vmem:[%s3323_s11 + $0x3e0] sm:$0xff] %v1580_v18  ;;  %v1403_v20 = vpop.f32.mrf.mxu0  ;;  %v1780_v21 = vpop.f32.mrf.mxu1  ;;  %v922_v18 = vld [vmem:[#allocation2 + $0xe8] sm:$0xff] }
 0x1a3   : > { %2257 = vst.msk [vmem:[%s3323_s11 + $0x3e8] sm:$0xff] %vm2132_vm1, %v1957_v19  ;;  %v982_v19 = vld [vmem:[#allocation2 + $0x2c8] sm:$0xff] }
 0x1a4   : > { %2138 = vst [vmem:[%s3323_s11 + $0x30] sm:$0xff] %v1403_v20 }
 0x1a5   : > { %2139 = vst.msk [vmem:[%s3323_s11 + $0x38] sm:$0xff] %vm2132_vm1, %v1780_v21  ;;  %2611 = vmatmul.msk.f32.gmra.mxu0 %vm245_vm0, %v912_v22  ;;  %2731 = vmatmul.msk.f32.gmra.mxu1 %vm245_vm0, %v912_v22 }
 0x1a6   : > { %2671 = vmatmul.msk.f32.gmra.mxu2 %vm245_vm0, %v972_v23  ;;  %2791 = vmatmul.msk.f32.gmra.mxu3 %vm245_vm0, %v972_v23 }
 0x1a9   : > { %v1583_v24 = vpop.f32.mrf.mxu2  ;;  %v1960_v25 = vpop.f32.mrf.mxu3 }
 0x1aa   : > { %2258 = vst [vmem:[%s3323_s11 + $0x3f0] sm:$0xff] %v1583_v24  ;;  %v1406_v26 = vpop.f32.mrf.mxu0  ;;  %v1783_v27 = vpop.f32.mrf.mxu1  ;;  %v923_v24 = vld [vmem:[#allocation2 + $0xf0] sm:$0xff] }
 0x1ab   : > { %2259 = vst.msk [vmem:[%s3323_s11 + $0x3f8] sm:$0xff] %vm2132_vm1, %v1960_v25  ;;  %v983_v25 = vld [vmem:[#allocation2 + $0x2d0] sm:$0xff] }
 0x1ac   : > { %2140 = vst [vmem:[%s3323_s11 + $0x40] sm:$0xff] %v1406_v26 }
 0x1ad   : > { %2141 = vst.msk [vmem:[%s3323_s11 + $0x48] sm:$0xff] %vm2132_vm1, %v1783_v27  ;;  %2612 = vmatmul.msk.f32.gmra.mxu0 %vm245_vm0, %v913_v28  ;;  %2732 = vmatmul.msk.f32.gmra.mxu1 %vm245_vm0, %v913_v28 }
 0x1ae   : > { %2672 = vmatmul.msk.f32.gmra.mxu2 %vm245_vm0, %v973_v29  ;;  %2792 = vmatmul.msk.f32.gmra.mxu3 %vm245_vm0, %v973_v29 }
 0x1b1   : > { %v1586_v30 = vpop.f32.mrf.mxu2  ;;  %v1963_v31 = vpop.f32.mrf.mxu3 }
 0x1b2   : > { %2260 = vst [vmem:[%s3323_s11 + $0x400] sm:$0xff] %v1586_v30  ;;  %v1409_v32 = vpop.f32.mrf.mxu0  ;;  %v1786_v33 = vpop.f32.mrf.mxu1  ;;  %v924_v30 = vld [vmem:[#allocation2 + $0xf8] sm:$0xff] }
 0x1b3   : > { %2261 = vst.msk [vmem:[%s3323_s11 + $0x408] sm:$0xff] %vm2132_vm1, %v1963_v31  ;;  %v984_v31 = vld [vmem:[#allocation2 + $0x2d8] sm:$0xff] }
 0x1b4   : > { %2142 = vst [vmem:[%s3323_s11 + $0x50] sm:$0xff] %v1409_v32 }
 0x1b5   : > { %2143 = vst.msk [vmem:[%s3323_s11 + $0x58] sm:$0xff] %vm2132_vm1, %v1786_v33  ;;  %2613 = vmatmul.msk.f32.gmra.mxu0 %vm245_vm0, %v914_v34  ;;  %2733 = vmatmul.msk.f32.gmra.mxu1 %vm245_vm0, %v914_v34 }
 0x1b6   : > { %2673 = vmatmul.msk.f32.gmra.mxu2 %vm245_vm0, %v974_v35  ;;  %2793 = vmatmul.msk.f32.gmra.mxu3 %vm245_vm0, %v974_v35 }
 0x1b9   : > { %v1589_v36 = vpop.f32.mrf.mxu2  ;;  %v1966_v37 = vpop.f32.mrf.mxu3 }
 0x1ba   : > { %2262 = vst [vmem:[%s3323_s11 + $0x410] sm:$0xff] %v1589_v36  ;;  %v1412_v38 = vpop.f32.mrf.mxu0  ;;  %v1789_v39 = vpop.f32.mrf.mxu1  ;;  %v925_v36 = vld [vmem:[#allocation2 + $0x100] sm:$0xff] }
 0x1bb   : > { %2263 = vst.msk [vmem:[%s3323_s11 + $0x418] sm:$0xff] %vm2132_vm1, %v1966_v37  ;;  %v985_v37 = vld [vmem:[#allocation2 + $0x2e0] sm:$0xff] }
 0x1bc   : > { %2144 = vst [vmem:[%s3323_s11 + $0x60] sm:$0xff] %v1412_v38 }
 0x1bd   : > { %2145 = vst.msk [vmem:[%s3323_s11 + $0x68] sm:$0xff] %vm2132_vm1, %v1789_v39  ;;  %2614 = vmatmul.msk.f32.gmra.mxu0 %vm245_vm0, %v915_v40  ;;  %2734 = vmatmul.msk.f32.gmra.mxu1 %vm245_vm0, %v915_v40 }
 0x1be   : > { %2674 = vmatmul.msk.f32.gmra.mxu2 %vm245_vm0, %v975_v41  ;;  %2794 = vmatmul.msk.f32.gmra.mxu3 %vm245_vm0, %v975_v41 }
 0x1c1   : > { %v1592_v42 = vpop.f32.mrf.mxu2  ;;  %v1969_v43 = vpop.f32.mrf.mxu3 }
 0x1c2   : > { %2264 = vst [vmem:[%s3323_s11 + $0x420] sm:$0xff] %v1592_v42  ;;  %v1415_v44 = vpop.f32.mrf.mxu0  ;;  %v1792_v45 = vpop.f32.mrf.mxu1  ;;  %v926_v42 = vld [vmem:[#allocation2 + $0x108] sm:$0xff] }
 0x1c3   : > { %2265 = vst.msk [vmem:[%s3323_s11 + $0x428] sm:$0xff] %vm2132_vm1, %v1969_v43  ;;  %v986_v43 = vld [vmem:[#allocation2 + $0x2e8] sm:$0xff] }
 0x1c4   : > { %2146 = vst [vmem:[%s3323_s11 + $0x70] sm:$0xff] %v1415_v44 }
 0x1c5   : > { %2147 = vst.msk [vmem:[%s3323_s11 + $0x78] sm:$0xff] %vm2132_vm1, %v1792_v45  ;;  %2615 = vmatmul.msk.f32.gmra.mxu0 %vm245_vm0, %v916_v46  ;;  %2735 = vmatmul.msk.f32.gmra.mxu1 %vm245_vm0, %v916_v46 }
 0x1c6   : > { %2675 = vmatmul.msk.f32.gmra.mxu2 %vm245_vm0, %v976_v47  ;;  %2795 = vmatmul.msk.f32.gmra.mxu3 %vm245_vm0, %v976_v47 }
 0x1c9   : > { %v1595_v48 = vpop.f32.mrf.mxu2  ;;  %v1972_v49 = vpop.f32.mrf.mxu3 }
 0x1ca   : > { %2266 = vst [vmem:[%s3323_s11 + $0x430] sm:$0xff] %v1595_v48  ;;  %v1418_v50 = vpop.f32.mrf.mxu0  ;;  %v1795_v51 = vpop.f32.mrf.mxu1  ;;  %v927_v48 = vld [vmem:[#allocation2 + $0x110] sm:$0xff] }
 0x1cb   : > { %2267 = vst.msk [vmem:[%s3323_s11 + $0x438] sm:$0xff] %vm2132_vm1, %v1972_v49  ;;  %v987_v49 = vld [vmem:[#allocation2 + $0x2f0] sm:$0xff] }
 0x1cc   : > { %2148 = vst [vmem:[%s3323_s11 + $0x80] sm:$0xff] %v1418_v50 }
 0x1cd   : > { %2149 = vst.msk [vmem:[%s3323_s11 + $0x88] sm:$0xff] %vm2132_vm1, %v1795_v51  ;;  %2616 = vmatmul.msk.f32.gmra.mxu0 %vm245_vm0, %v917_v52  ;;  %2736 = vmatmul.msk.f32.gmra.mxu1 %vm245_vm0, %v917_v52 }
 0x1ce   : > { %2676 = vmatmul.msk.f32.gmra.mxu2 %vm245_vm0, %v977_v53  ;;  %2796 = vmatmul.msk.f32.gmra.mxu3 %vm245_vm0, %v977_v53 }
 0x1d1   : > { %v1598_v54 = vpop.f32.mrf.mxu2  ;;  %v1975_v55 = vpop.f32.mrf.mxu3 }
 0x1d2   : > { %2268 = vst [vmem:[%s3323_s11 + $0x440] sm:$0xff] %v1598_v54  ;;  %v1421_v56 = vpop.f32.mrf.mxu0  ;;  %v1798_v57 = vpop.f32.mrf.mxu1  ;;  %v928_v54 = vld [vmem:[#allocation2 + $0x118] sm:$0xff] }
 0x1d3   : > { %2269 = vst.msk [vmem:[%s3323_s11 + $0x448] sm:$0xff] %vm2132_vm1, %v1975_v55  ;;  %v988_v55 = vld [vmem:[#allocation2 + $0x2f8] sm:$0xff] }
 0x1d4   : > { %2150 = vst [vmem:[%s3323_s11 + $0x90] sm:$0xff] %v1421_v56 }
 0x1d5   : > { %2151 = vst.msk [vmem:[%s3323_s11 + $0x98] sm:$0xff] %vm2132_vm1, %v1798_v57  ;;  %2617 = vmatmul.msk.f32.gmra.mxu0 %vm245_vm0, %v918_v58  ;;  %2737 = vmatmul.msk.f32.gmra.mxu1 %vm245_vm0, %v918_v58 }
 0x1d6   : > { %2677 = vmatmul.msk.f32.gmra.mxu2 %vm245_vm0, %v978_v59  ;;  %2797 = vmatmul.msk.f32.gmra.mxu3 %vm245_vm0, %v978_v59 }
 0x1d9   : > { %v1601_v60 = vpop.f32.mrf.mxu2  ;;  %v1978_v61 = vpop.f32.mrf.mxu3 }
 0x1da   : > { %2270 = vst [vmem:[%s3323_s11 + $0x450] sm:$0xff] %v1601_v60  ;;  %v1424_v62 = vpop.f32.mrf.mxu0  ;;  %v1801_v63 = vpop.f32.mrf.mxu1  ;;  %v929_v60 = vld [vmem:[#allocation2 + $0x120] sm:$0xff] }
 0x1db   : > { %2271 = vst.msk [vmem:[%s3323_s11 + $0x458] sm:$0xff] %vm2132_vm1, %v1978_v61  ;;  %v989_v61 = vld [vmem:[#allocation2 + $0x300] sm:$0xff] }
 0x1dc   : > { %2152 = vst [vmem:[%s3323_s11 + $0xa0] sm:$0xff] %v1424_v62 }
 0x1dd   : > { %2153 = vst.msk [vmem:[%s3323_s11 + $0xa8] sm:$0xff] %vm2132_vm1, %v1801_v63  ;;  %2618 = vmatmul.msk.f32.gmra.mxu0 %vm245_vm0, %v919_v0  ;;  %2738 = vmatmul.msk.f32.gmra.mxu1 %vm245_vm0, %v919_v0 }
 0x1de   : > { %2678 = vmatmul.msk.f32.gmra.mxu2 %vm245_vm0, %v979_v1  ;;  %2798 = vmatmul.msk.f32.gmra.mxu3 %vm245_vm0, %v979_v1 }
 0x1e1   : > { %v1604_v2 = vpop.f32.mrf.mxu2  ;;  %v1981_v3 = vpop.f32.mrf.mxu3 }
 0x1e2   : > { %2272 = vst [vmem:[%s3323_s11 + $0x460] sm:$0xff] %v1604_v2  ;;  %v1427_v4 = vpop.f32.mrf.mxu0  ;;  %v1804_v5 = vpop.f32.mrf.mxu1  ;;  %v930_v2 = vld [vmem:[#allocation2 + $0x128] sm:$0xff] }
 0x1e3   : > { %2273 = vst.msk [vmem:[%s3323_s11 + $0x468] sm:$0xff] %vm2132_vm1, %v1981_v3  ;;  %v990_v3 = vld [vmem:[#allocation2 + $0x308] sm:$0xff] }
 0x1e4   : > { %2154 = vst [vmem:[%s3323_s11 + $0xb0] sm:$0xff] %v1427_v4 }
 0x1e5   : > { %2155 = vst.msk [vmem:[%s3323_s11 + $0xb8] sm:$0xff] %vm2132_vm1, %v1804_v5  ;;  %2619 = vmatmul.msk.f32.gmra.mxu0 %vm245_vm0, %v920_v6  ;;  %2739 = vmatmul.msk.f32.gmra.mxu1 %vm245_vm0, %v920_v6 }
 0x1e6   : > { %2679 = vmatmul.msk.f32.gmra.mxu2 %vm245_vm0, %v980_v7  ;;  %2799 = vmatmul.msk.f32.gmra.mxu3 %vm245_vm0, %v980_v7 }
 0x1e9   : > { %v1607_v8 = vpop.f32.mrf.mxu2  ;;  %v1984_v9 = vpop.f32.mrf.mxu3 }
 0x1ea   : > { %2274 = vst [vmem:[%s3323_s11 + $0x470] sm:$0xff] %v1607_v8  ;;  %v1430_v10 = vpop.f32.mrf.mxu0  ;;  %v1807_v11 = vpop.f32.mrf.mxu1  ;;  %v931_v8 = vld [vmem:[#allocation2 + $0x130] sm:$0xff] }
 0x1eb   : > { %2275 = vst.msk [vmem:[%s3323_s11 + $0x478] sm:$0xff] %vm2132_vm1, %v1984_v9  ;;  %v991_v9 = vld [vmem:[#allocation2 + $0x310] sm:$0xff] }
 0x1ec   : > { %2156 = vst [vmem:[%s3323_s11 + $0xc0] sm:$0xff] %v1430_v10 }
 0x1ed   : > { %2157 = vst.msk [vmem:[%s3323_s11 + $0xc8] sm:$0xff] %vm2132_vm1, %v1807_v11  ;;  %2620 = vmatmul.msk.f32.gmra.mxu0 %vm245_vm0, %v921_v12  ;;  %2740 = vmatmul.msk.f32.gmra.mxu1 %vm245_vm0, %v921_v12 }
 0x1ee   : > { %2680 = vmatmul.msk.f32.gmra.mxu2 %vm245_vm0, %v981_v13  ;;  %2800 = vmatmul.msk.f32.gmra.mxu3 %vm245_vm0, %v981_v13 }
 0x1f1   : > { %v1610_v14 = vpop.f32.mrf.mxu2  ;;  %v1987_v15 = vpop.f32.mrf.mxu3 }
 0x1f2   : > { %2276 = vst [vmem:[%s3323_s11 + $0x480] sm:$0xff] %v1610_v14  ;;  %v1433_v16 = vpop.f32.mrf.mxu0  ;;  %v1810_v17 = vpop.f32.mrf.mxu1  ;;  %v932_v14 = vld [vmem:[#allocation2 + $0x138] sm:$0xff] }
 0x1f3   : > { %2277 = vst.msk [vmem:[%s3323_s11 + $0x488] sm:$0xff] %vm2132_vm1, %v1987_v15  ;;  %v992_v15 = vld [vmem:[#allocation2 + $0x318] sm:$0xff] }
 0x1f4   : > { %2158 = vst [vmem:[%s3323_s11 + $0xd0] sm:$0xff] %v1433_v16 }
 0x1f5   : > { %2159 = vst.msk [vmem:[%s3323_s11 + $0xd8] sm:$0xff] %vm2132_vm1, %v1810_v17  ;;  %2621 = vmatmul.msk.f32.gmra.mxu0 %vm245_vm0, %v922_v18  ;;  %2741 = vmatmul.msk.f32.gmra.mxu1 %vm245_vm0, %v922_v18 }
 0x1f6   : > { %2681 = vmatmul.msk.f32.gmra.mxu2 %vm245_vm0, %v982_v19  ;;  %2801 = vmatmul.msk.f32.gmra.mxu3 %vm245_vm0, %v982_v19 }
 0x1f9   : > { %v1613_v20 = vpop.f32.mrf.mxu2  ;;  %v1990_v21 = vpop.f32.mrf.mxu3 }
 0x1fa   : > { %2278 = vst [vmem:[%s3323_s11 + $0x490] sm:$0xff] %v1613_v20  ;;  %v1436_v22 = vpop.f32.mrf.mxu0  ;;  %v1813_v23 = vpop.f32.mrf.mxu1  ;;  %v933_v20 = vld [vmem:[#allocation2 + $0x140] sm:$0xff] }
 0x1fb   : > { %2279 = vst.msk [vmem:[%s3323_s11 + $0x498] sm:$0xff] %vm2132_vm1, %v1990_v21  ;;  %v993_v21 = vld [vmem:[#allocation2 + $0x320] sm:$0xff] }
 0x1fc   : > { %2160 = vst [vmem:[%s3323_s11 + $0xe0] sm:$0xff] %v1436_v22 }
 0x1fd   : > { %2161 = vst.msk [vmem:[%s3323_s11 + $0xe8] sm:$0xff] %vm2132_vm1, %v1813_v23  ;;  %2622 = vmatmul.msk.f32.gmra.mxu0 %vm245_vm0, %v923_v24  ;;  %2742 = vmatmul.msk.f32.gmra.mxu1 %vm245_vm0, %v923_v24 }
 0x1fe   : > { %2682 = vmatmul.msk.f32.gmra.mxu2 %vm245_vm0, %v983_v25  ;;  %2802 = vmatmul.msk.f32.gmra.mxu3 %vm245_vm0, %v983_v25 }
 0x201   : > { %v1616_v26 = vpop.f32.mrf.mxu2  ;;  %v1993_v27 = vpop.f32.mrf.mxu3 }
 0x202   : > { %2280 = vst [vmem:[%s3323_s11 + $0x4a0] sm:$0xff] %v1616_v26  ;;  %v1439_v28 = vpop.f32.mrf.mxu0  ;;  %v1816_v29 = vpop.f32.mrf.mxu1  ;;  %v934_v26 = vld [vmem:[#allocation2 + $0x148] sm:$0xff] }
 0x203   : > { %2281 = vst.msk [vmem:[%s3323_s11 + $0x4a8] sm:$0xff] %vm2132_vm1, %v1993_v27  ;;  %v994_v27 = vld [vmem:[#allocation2 + $0x328] sm:$0xff] }
 0x204   : > { %2162 = vst [vmem:[%s3323_s11 + $0xf0] sm:$0xff] %v1439_v28 }
 0x205   : > { %2163 = vst.msk [vmem:[%s3323_s11 + $0xf8] sm:$0xff] %vm2132_vm1, %v1816_v29  ;;  %2623 = vmatmul.msk.f32.gmra.mxu0 %vm245_vm0, %v924_v30  ;;  %2743 = vmatmul.msk.f32.gmra.mxu1 %vm245_vm0, %v924_v30 }
 0x206   : > { %2683 = vmatmul.msk.f32.gmra.mxu2 %vm245_vm0, %v984_v31  ;;  %2803 = vmatmul.msk.f32.gmra.mxu3 %vm245_vm0, %v984_v31 }
 0x209   : > { %v1619_v32 = vpop.f32.mrf.mxu2  ;;  %v1996_v33 = vpop.f32.mrf.mxu3 }
 0x20a   : > { %2282 = vst [vmem:[%s3323_s11 + $0x4b0] sm:$0xff] %v1619_v32  ;;  %v1442_v34 = vpop.f32.mrf.mxu0  ;;  %v1819_v35 = vpop.f32.mrf.mxu1  ;;  %v935_v32 = vld [vmem:[#allocation2 + $0x150] sm:$0xff] }
 0x20b   : > { %2283 = vst.msk [vmem:[%s3323_s11 + $0x4b8] sm:$0xff] %vm2132_vm1, %v1996_v33  ;;  %v995_v33 = vld [vmem:[#allocation2 + $0x330] sm:$0xff] }
 0x20c   : > { %2164 = vst [vmem:[%s3323_s11 + $0x100] sm:$0xff] %v1442_v34 }
 0x20d   : > { %2165 = vst.msk [vmem:[%s3323_s11 + $0x108] sm:$0xff] %vm2132_vm1, %v1819_v35  ;;  %2624 = vmatmul.msk.f32.gmra.mxu0 %vm245_vm0, %v925_v36  ;;  %2744 = vmatmul.msk.f32.gmra.mxu1 %vm245_vm0, %v925_v36 }
 0x20e   : > { %2684 = vmatmul.msk.f32.gmra.mxu2 %vm245_vm0, %v985_v37  ;;  %2804 = vmatmul.msk.f32.gmra.mxu3 %vm245_vm0, %v985_v37 }
 0x211   : > { %v1622_v38 = vpop.f32.mrf.mxu2  ;;  %v1999_v39 = vpop.f32.mrf.mxu3 }
 0x212   : > { %2284 = vst [vmem:[%s3323_s11 + $0x4c0] sm:$0xff] %v1622_v38  ;;  %v1445_v40 = vpop.f32.mrf.mxu0  ;;  %v1822_v41 = vpop.f32.mrf.mxu1  ;;  %v936_v38 = vld [vmem:[#allocation2 + $0x158] sm:$0xff] }
 0x213   : > { %2285 = vst.msk [vmem:[%s3323_s11 + $0x4c8] sm:$0xff] %vm2132_vm1, %v1999_v39  ;;  %v996_v39 = vld [vmem:[#allocation2 + $0x338] sm:$0xff] }
 0x214   : > { %2166 = vst [vmem:[%s3323_s11 + $0x110] sm:$0xff] %v1445_v40 }
 0x215   : > { %2167 = vst.msk [vmem:[%s3323_s11 + $0x118] sm:$0xff] %vm2132_vm1, %v1822_v41  ;;  %2625 = vmatmul.msk.f32.gmra.mxu0 %vm245_vm0, %v926_v42  ;;  %2745 = vmatmul.msk.f32.gmra.mxu1 %vm245_vm0, %v926_v42 }
 0x216   : > { %2685 = vmatmul.msk.f32.gmra.mxu2 %vm245_vm0, %v986_v43  ;;  %2805 = vmatmul.msk.f32.gmra.mxu3 %vm245_vm0, %v986_v43 }
 0x219   : > { %v1625_v44 = vpop.f32.mrf.mxu2  ;;  %v2002_v45 = vpop.f32.mrf.mxu3 }
 0x21a   : > { %2286 = vst [vmem:[%s3323_s11 + $0x4d0] sm:$0xff] %v1625_v44  ;;  %v1448_v46 = vpop.f32.mrf.mxu0  ;;  %v1825_v47 = vpop.f32.mrf.mxu1  ;;  %v937_v44 = vld [vmem:[#allocation2 + $0x160] sm:$0xff] }
 0x21b   : > { %2287 = vst.msk [vmem:[%s3323_s11 + $0x4d8] sm:$0xff] %vm2132_vm1, %v2002_v45  ;;  %v997_v45 = vld [vmem:[#allocation2 + $0x340] sm:$0xff] }
 0x21c   : > { %2168 = vst [vmem:[%s3323_s11 + $0x120] sm:$0xff] %v1448_v46 }
 0x21d   : > { %2169 = vst.msk [vmem:[%s3323_s11 + $0x128] sm:$0xff] %vm2132_vm1, %v1825_v47  ;;  %2626 = vmatmul.msk.f32.gmra.mxu0 %vm245_vm0, %v927_v48  ;;  %2746 = vmatmul.msk.f32.gmra.mxu1 %vm245_vm0, %v927_v48 }
 0x21e   : > { %2686 = vmatmul.msk.f32.gmra.mxu2 %vm245_vm0, %v987_v49  ;;  %2806 = vmatmul.msk.f32.gmra.mxu3 %vm245_vm0, %v987_v49 }
 0x221   : > { %v1628_v50 = vpop.f32.mrf.mxu2  ;;  %v2005_v51 = vpop.f32.mrf.mxu3 }
 0x222   : > { %2288 = vst [vmem:[%s3323_s11 + $0x4e0] sm:$0xff] %v1628_v50  ;;  %v1451_v52 = vpop.f32.mrf.mxu0  ;;  %v1828_v53 = vpop.f32.mrf.mxu1  ;;  %v938_v50 = vld [vmem:[#allocation2 + $0x168] sm:$0xff] }
 0x223   : > { %2289 = vst.msk [vmem:[%s3323_s11 + $0x4e8] sm:$0xff] %vm2132_vm1, %v2005_v51  ;;  %v998_v51 = vld [vmem:[#allocation2 + $0x348] sm:$0xff] }
 0x224   : > { %2170 = vst [vmem:[%s3323_s11 + $0x130] sm:$0xff] %v1451_v52 }
 0x225   : > { %2171 = vst.msk [vmem:[%s3323_s11 + $0x138] sm:$0xff] %vm2132_vm1, %v1828_v53  ;;  %2627 = vmatmul.msk.f32.gmra.mxu0 %vm245_vm0, %v928_v54  ;;  %2747 = vmatmul.msk.f32.gmra.mxu1 %vm245_vm0, %v928_v54 }
 0x226   : > { %2687 = vmatmul.msk.f32.gmra.mxu2 %vm245_vm0, %v988_v55  ;;  %2807 = vmatmul.msk.f32.gmra.mxu3 %vm245_vm0, %v988_v55 }
 0x229   : > { %v1631_v56 = vpop.f32.mrf.mxu2  ;;  %v2008_v57 = vpop.f32.mrf.mxu3 }
 0x22a   : > { %2290 = vst [vmem:[%s3323_s11 + $0x4f0] sm:$0xff] %v1631_v56  ;;  %v1454_v58 = vpop.f32.mrf.mxu0  ;;  %v1831_v59 = vpop.f32.mrf.mxu1  ;;  %v939_v56 = vld [vmem:[#allocation2 + $0x170] sm:$0xff] }
 0x22b   : > { %2291 = vst.msk [vmem:[%s3323_s11 + $0x4f8] sm:$0xff] %vm2132_vm1, %v2008_v57  ;;  %v999_v57 = vld [vmem:[#allocation2 + $0x350] sm:$0xff] }
 0x22c   : > { %2172 = vst [vmem:[%s3323_s11 + $0x140] sm:$0xff] %v1454_v58 }
 0x22d   : > { %2173 = vst.msk [vmem:[%s3323_s11 + $0x148] sm:$0xff] %vm2132_vm1, %v1831_v59  ;;  %2628 = vmatmul.msk.f32.gmra.mxu0 %vm245_vm0, %v929_v60  ;;  %2748 = vmatmul.msk.f32.gmra.mxu1 %vm245_vm0, %v929_v60 }
 0x22e   : > { %2688 = vmatmul.msk.f32.gmra.mxu2 %vm245_vm0, %v989_v61  ;;  %2808 = vmatmul.msk.f32.gmra.mxu3 %vm245_vm0, %v989_v61 }
 0x231   : > { %v1634_v62 = vpop.f32.mrf.mxu2  ;;  %v2011_v63 = vpop.f32.mrf.mxu3 }
 0x232   : > { %2292 = vst [vmem:[%s3323_s11 + $0x500] sm:$0xff] %v1634_v62  ;;  %v1457_v0 = vpop.f32.mrf.mxu0  ;;  %v1834_v1 = vpop.f32.mrf.mxu1  ;;  %v940_v62 = vld [vmem:[#allocation2 + $0x178] sm:$0xff] }
 0x233   : > { %2293 = vst.msk [vmem:[%s3323_s11 + $0x508] sm:$0xff] %vm2132_vm1, %v2011_v63  ;;  %v1000_v63 = vld [vmem:[#allocation2 + $0x358] sm:$0xff] }
 0x234   : > { %2174 = vst [vmem:[%s3323_s11 + $0x150] sm:$0xff] %v1457_v0 }
 0x235   : > { %2175 = vst.msk [vmem:[%s3323_s11 + $0x158] sm:$0xff] %vm2132_vm1, %v1834_v1  ;;  %2629 = vmatmul.msk.f32.gmra.mxu0 %vm245_vm0, %v930_v2  ;;  %2749 = vmatmul.msk.f32.gmra.mxu1 %vm245_vm0, %v930_v2 }
 0x236   : > { %2689 = vmatmul.msk.f32.gmra.mxu2 %vm245_vm0, %v990_v3  ;;  %2809 = vmatmul.msk.f32.gmra.mxu3 %vm245_vm0, %v990_v3 }
 0x239   : > { %v1637_v4 = vpop.f32.mrf.mxu2  ;;  %v2014_v5 = vpop.f32.mrf.mxu3 }
 0x23a   : > { %2294 = vst [vmem:[%s3323_s11 + $0x510] sm:$0xff] %v1637_v4  ;;  %v1460_v6 = vpop.f32.mrf.mxu0  ;;  %v1837_v7 = vpop.f32.mrf.mxu1  ;;  %v941_v4 = vld [vmem:[#allocation2 + $0x180] sm:$0xff] }
 0x23b   : > { %2295 = vst.msk [vmem:[%s3323_s11 + $0x518] sm:$0xff] %vm2132_vm1, %v2014_v5  ;;  %v1001_v5 = vld [vmem:[#allocation2 + $0x360] sm:$0xff] }
 0x23c   : > { %2176 = vst [vmem:[%s3323_s11 + $0x160] sm:$0xff] %v1460_v6 }
 0x23d   : > { %2177 = vst.msk [vmem:[%s3323_s11 + $0x168] sm:$0xff] %vm2132_vm1, %v1837_v7  ;;  %2630 = vmatmul.msk.f32.gmra.mxu0 %vm245_vm0, %v931_v8  ;;  %2750 = vmatmul.msk.f32.gmra.mxu1 %vm245_vm0, %v931_v8 }
 0x23e   : > { %2690 = vmatmul.msk.f32.gmra.mxu2 %vm245_vm0, %v991_v9  ;;  %2810 = vmatmul.msk.f32.gmra.mxu3 %vm245_vm0, %v991_v9 }
 0x241   : > { %v1640_v10 = vpop.f32.mrf.mxu2  ;;  %v2017_v11 = vpop.f32.mrf.mxu3 }
 0x242   : > { %2296 = vst [vmem:[%s3323_s11 + $0x520] sm:$0xff] %v1640_v10  ;;  %v1463_v12 = vpop.f32.mrf.mxu0  ;;  %v1840_v13 = vpop.f32.mrf.mxu1  ;;  %v942_v10 = vld [vmem:[#allocation2 + $0x188] sm:$0xff] }
 0x243   : > { %2297 = vst.msk [vmem:[%s3323_s11 + $0x528] sm:$0xff] %vm2132_vm1, %v2017_v11  ;;  %v1002_v11 = vld [vmem:[#allocation2 + $0x368] sm:$0xff] }
 0x244   : > { %2178 = vst [vmem:[%s3323_s11 + $0x170] sm:$0xff] %v1463_v12 }
 0x245   : > { %2179 = vst.msk [vmem:[%s3323_s11 + $0x178] sm:$0xff] %vm2132_vm1, %v1840_v13  ;;  %2631 = vmatmul.msk.f32.gmra.mxu0 %vm245_vm0, %v932_v14  ;;  %2751 = vmatmul.msk.f32.gmra.mxu1 %vm245_vm0, %v932_v14 }
 0x246   : > { %2691 = vmatmul.msk.f32.gmra.mxu2 %vm245_vm0, %v992_v15  ;;  %2811 = vmatmul.msk.f32.gmra.mxu3 %vm245_vm0, %v992_v15 }
 0x249   : > { %v1643_v16 = vpop.f32.mrf.mxu2  ;;  %v2020_v17 = vpop.f32.mrf.mxu3 }
 0x24a   : > { %2298 = vst [vmem:[%s3323_s11 + $0x530] sm:$0xff] %v1643_v16  ;;  %v1466_v18 = vpop.f32.mrf.mxu0  ;;  %v1843_v19 = vpop.f32.mrf.mxu1  ;;  %v943_v16 = vld [vmem:[#allocation2 + $0x190] sm:$0xff] }
 0x24b   : > { %2299 = vst.msk [vmem:[%s3323_s11 + $0x538] sm:$0xff] %vm2132_vm1, %v2020_v17  ;;  %v1003_v17 = vld [vmem:[#allocation2 + $0x370] sm:$0xff] }
 0x24c   : > { %2180 = vst [vmem:[%s3323_s11 + $0x180] sm:$0xff] %v1466_v18 }
 0x24d   : > { %2181 = vst.msk [vmem:[%s3323_s11 + $0x188] sm:$0xff] %vm2132_vm1, %v1843_v19  ;;  %2632 = vmatmul.msk.f32.gmra.mxu0 %vm245_vm0, %v933_v20  ;;  %2752 = vmatmul.msk.f32.gmra.mxu1 %vm245_vm0, %v933_v20 }
 0x24e   : > { %2692 = vmatmul.msk.f32.gmra.mxu2 %vm245_vm0, %v993_v21  ;;  %2812 = vmatmul.msk.f32.gmra.mxu3 %vm245_vm0, %v993_v21 }
 0x251   : > { %v1646_v22 = vpop.f32.mrf.mxu2  ;;  %v2023_v23 = vpop.f32.mrf.mxu3 }
 0x252   : > { %2300 = vst [vmem:[%s3323_s11 + $0x540] sm:$0xff] %v1646_v22  ;;  %v1469_v24 = vpop.f32.mrf.mxu0  ;;  %v1846_v25 = vpop.f32.mrf.mxu1  ;;  %v944_v22 = vld [vmem:[#allocation2 + $0x198] sm:$0xff] }
 0x253   : > { %2301 = vst.msk [vmem:[%s3323_s11 + $0x548] sm:$0xff] %vm2132_vm1, %v2023_v23  ;;  %v1004_v23 = vld [vmem:[#allocation2 + $0x378] sm:$0xff] }
 0x254   : > { %2182 = vst [vmem:[%s3323_s11 + $0x190] sm:$0xff] %v1469_v24 }
 0x255   : > { %2183 = vst.msk [vmem:[%s3323_s11 + $0x198] sm:$0xff] %vm2132_vm1, %v1846_v25  ;;  %2633 = vmatmul.msk.f32.gmra.mxu0 %vm245_vm0, %v934_v26  ;;  %2753 = vmatmul.msk.f32.gmra.mxu1 %vm245_vm0, %v934_v26 }
 0x256   : > { %2693 = vmatmul.msk.f32.gmra.mxu2 %vm245_vm0, %v994_v27  ;;  %2813 = vmatmul.msk.f32.gmra.mxu3 %vm245_vm0, %v994_v27 }
 0x259   : > { %v1649_v28 = vpop.f32.mrf.mxu2  ;;  %v2026_v29 = vpop.f32.mrf.mxu3 }
 0x25a   : > { %2302 = vst [vmem:[%s3323_s11 + $0x550] sm:$0xff] %v1649_v28  ;;  %v1472_v30 = vpop.f32.mrf.mxu0  ;;  %v1849_v31 = vpop.f32.mrf.mxu1  ;;  %v945_v28 = vld [vmem:[#allocation2 + $0x1a0] sm:$0xff] }
 0x25b   : > { %2303 = vst.msk [vmem:[%s3323_s11 + $0x558] sm:$0xff] %vm2132_vm1, %v2026_v29  ;;  %v1005_v29 = vld [vmem:[#allocation2 + $0x380] sm:$0xff] }
 0x25c   : > { %2184 = vst [vmem:[%s3323_s11 + $0x1a0] sm:$0xff] %v1472_v30 }
 0x25d   : > { %2185 = vst.msk [vmem:[%s3323_s11 + $0x1a8] sm:$0xff] %vm2132_vm1, %v1849_v31  ;;  %2634 = vmatmul.msk.f32.gmra.mxu0 %vm245_vm0, %v935_v32  ;;  %2754 = vmatmul.msk.f32.gmra.mxu1 %vm245_vm0, %v935_v32 }
 0x25e   : > { %2694 = vmatmul.msk.f32.gmra.mxu2 %vm245_vm0, %v995_v33  ;;  %2814 = vmatmul.msk.f32.gmra.mxu3 %vm245_vm0, %v995_v33 }
 0x261   : > { %v1652_v34 = vpop.f32.mrf.mxu2  ;;  %v2029_v35 = vpop.f32.mrf.mxu3 }
 0x262   : > { %2304 = vst [vmem:[%s3323_s11 + $0x560] sm:$0xff] %v1652_v34  ;;  %v1475_v36 = vpop.f32.mrf.mxu0  ;;  %v1852_v37 = vpop.f32.mrf.mxu1  ;;  %v946_v34 = vld [vmem:[#allocation2 + $0x1a8] sm:$0xff] }
 0x263   : > { %2305 = vst.msk [vmem:[%s3323_s11 + $0x568] sm:$0xff] %vm2132_vm1, %v2029_v35  ;;  %v1006_v35 = vld [vmem:[#allocation2 + $0x388] sm:$0xff] }
 0x264   : > { %2186 = vst [vmem:[%s3323_s11 + $0x1b0] sm:$0xff] %v1475_v36 }
 0x265   : > { %2187 = vst.msk [vmem:[%s3323_s11 + $0x1b8] sm:$0xff] %vm2132_vm1, %v1852_v37  ;;  %2635 = vmatmul.msk.f32.gmra.mxu0 %vm245_vm0, %v936_v38  ;;  %2755 = vmatmul.msk.f32.gmra.mxu1 %vm245_vm0, %v936_v38 }
 0x266   : > { %2695 = vmatmul.msk.f32.gmra.mxu2 %vm245_vm0, %v996_v39  ;;  %2815 = vmatmul.msk.f32.gmra.mxu3 %vm245_vm0, %v996_v39 }
 0x269   : > { %v1655_v40 = vpop.f32.mrf.mxu2  ;;  %v2032_v41 = vpop.f32.mrf.mxu3 }
 0x26a   : > { %2306 = vst [vmem:[%s3323_s11 + $0x570] sm:$0xff] %v1655_v40  ;;  %v1478_v42 = vpop.f32.mrf.mxu0  ;;  %v1855_v43 = vpop.f32.mrf.mxu1  ;;  %v947_v40 = vld [vmem:[#allocation2 + $0x1b0] sm:$0xff] }
 0x26b   : > { %2307 = vst.msk [vmem:[%s3323_s11 + $0x578] sm:$0xff] %vm2132_vm1, %v2032_v41  ;;  %v1007_v41 = vld [vmem:[#allocation2 + $0x390] sm:$0xff] }
 0x26c   : > { %2188 = vst [vmem:[%s3323_s11 + $0x1c0] sm:$0xff] %v1478_v42 }
 0x26d   : > { %2189 = vst.msk [vmem:[%s3323_s11 + $0x1c8] sm:$0xff] %vm2132_vm1, %v1855_v43  ;;  %2636 = vmatmul.msk.f32.gmra.mxu0 %vm245_vm0, %v937_v44  ;;  %2756 = vmatmul.msk.f32.gmra.mxu1 %vm245_vm0, %v937_v44 }
 0x26e   : > { %2696 = vmatmul.msk.f32.gmra.mxu2 %vm245_vm0, %v997_v45  ;;  %2816 = vmatmul.msk.f32.gmra.mxu3 %vm245_vm0, %v997_v45 }
 0x271   : > { %v1658_v46 = vpop.f32.mrf.mxu2  ;;  %v2035_v47 = vpop.f32.mrf.mxu3 }
 0x272   : > { %2308 = vst [vmem:[%s3323_s11 + $0x580] sm:$0xff] %v1658_v46  ;;  %v1481_v48 = vpop.f32.mrf.mxu0  ;;  %v1858_v49 = vpop.f32.mrf.mxu1  ;;  %v948_v46 = vld [vmem:[#allocation2 + $0x1b8] sm:$0xff] }
 0x273   : > { %2309 = vst.msk [vmem:[%s3323_s11 + $0x588] sm:$0xff] %vm2132_vm1, %v2035_v47  ;;  %v1008_v47 = vld [vmem:[#allocation2 + $0x398] sm:$0xff] }
 0x274   : > { %2190 = vst [vmem:[%s3323_s11 + $0x1d0] sm:$0xff] %v1481_v48 }
 0x275   : > { %2191 = vst.msk [vmem:[%s3323_s11 + $0x1d8] sm:$0xff] %vm2132_vm1, %v1858_v49  ;;  %2637 = vmatmul.msk.f32.gmra.mxu0 %vm245_vm0, %v938_v50  ;;  %2757 = vmatmul.msk.f32.gmra.mxu1 %vm245_vm0, %v938_v50 }
 0x276   : > { %2697 = vmatmul.msk.f32.gmra.mxu2 %vm245_vm0, %v998_v51  ;;  %2817 = vmatmul.msk.f32.gmra.mxu3 %vm245_vm0, %v998_v51 }
 0x279   : > { %v1661_v52 = vpop.f32.mrf.mxu2  ;;  %v2038_v53 = vpop.f32.mrf.mxu3 }
 0x27a   : > { %2310 = vst [vmem:[%s3323_s11 + $0x590] sm:$0xff] %v1661_v52  ;;  %v1484_v54 = vpop.f32.mrf.mxu0  ;;  %v1861_v55 = vpop.f32.mrf.mxu1  ;;  %v949_v52 = vld [vmem:[#allocation2 + $0x1c0] sm:$0xff] }
 0x27b   : > { %2311 = vst.msk [vmem:[%s3323_s11 + $0x598] sm:$0xff] %vm2132_vm1, %v2038_v53  ;;  %v1009_v53 = vld [vmem:[#allocation2 + $0x3a0] sm:$0xff] }
 0x27c   : > { %2192 = vst [vmem:[%s3323_s11 + $0x1e0] sm:$0xff] %v1484_v54 }
 0x27d   : > { %2193 = vst.msk [vmem:[%s3323_s11 + $0x1e8] sm:$0xff] %vm2132_vm1, %v1861_v55  ;;  %2638 = vmatmul.msk.f32.gmra.mxu0 %vm245_vm0, %v939_v56  ;;  %2758 = vmatmul.msk.f32.gmra.mxu1 %vm245_vm0, %v939_v56 }
 0x27e   : > { %2698 = vmatmul.msk.f32.gmra.mxu2 %vm245_vm0, %v999_v57  ;;  %2818 = vmatmul.msk.f32.gmra.mxu3 %vm245_vm0, %v999_v57 }
 0x281   : > { %v1664_v58 = vpop.f32.mrf.mxu2  ;;  %v2041_v59 = vpop.f32.mrf.mxu3 }
 0x282   : > { %2312 = vst [vmem:[%s3323_s11 + $0x5a0] sm:$0xff] %v1664_v58  ;;  %v1487_v60 = vpop.f32.mrf.mxu0  ;;  %v1864_v61 = vpop.f32.mrf.mxu1  ;;  %v950_v58 = vld [vmem:[#allocation2 + $0x1c8] sm:$0xff] }
 0x283   : > { %2313 = vst.msk [vmem:[%s3323_s11 + $0x5a8] sm:$0xff] %vm2132_vm1, %v2041_v59  ;;  %v1010_v59 = vld [vmem:[#allocation2 + $0x3a8] sm:$0xff] }
 0x284   : > { %2194 = vst [vmem:[%s3323_s11 + $0x1f0] sm:$0xff] %v1487_v60 }
 0x285   : > { %2195 = vst.msk [vmem:[%s3323_s11 + $0x1f8] sm:$0xff] %vm2132_vm1, %v1864_v61  ;;  %2639 = vmatmul.msk.f32.gmra.mxu0 %vm245_vm0, %v940_v62  ;;  %2759 = vmatmul.msk.f32.gmra.mxu1 %vm245_vm0, %v940_v62 }
 0x286   : > { %2699 = vmatmul.msk.f32.gmra.mxu2 %vm245_vm0, %v1000_v63  ;;  %2819 = vmatmul.msk.f32.gmra.mxu3 %vm245_vm0, %v1000_v63 }
 0x289   : > { %v1667_v0 = vpop.f32.mrf.mxu2  ;;  %v2044_v1 = vpop.f32.mrf.mxu3 }
 0x28a   : > { %2314 = vst [vmem:[%s3323_s11 + $0x5b0] sm:$0xff] %v1667_v0  ;;  %v1490_v2 = vpop.f32.mrf.mxu0  ;;  %v1867_v3 = vpop.f32.mrf.mxu1  ;;  %v951_v0 = vld [vmem:[#allocation2 + $0x1d0] sm:$0xff] }
 0x28b   : > { %2315 = vst.msk [vmem:[%s3323_s11 + $0x5b8] sm:$0xff] %vm2132_vm1, %v2044_v1  ;;  %v1011_v1 = vld [vmem:[#allocation2 + $0x3b0] sm:$0xff] }
 0x28c   : > { %2196 = vst [vmem:[%s3323_s11 + $0x200] sm:$0xff] %v1490_v2 }
 0x28d   : > { %2197 = vst.msk [vmem:[%s3323_s11 + $0x208] sm:$0xff] %vm2132_vm1, %v1867_v3  ;;  %2640 = vmatmul.msk.f32.gmra.mxu0 %vm245_vm0, %v941_v4  ;;  %2760 = vmatmul.msk.f32.gmra.mxu1 %vm245_vm0, %v941_v4 }
 0x28e   : > { %2700 = vmatmul.msk.f32.gmra.mxu2 %vm245_vm0, %v1001_v5  ;;  %2820 = vmatmul.msk.f32.gmra.mxu3 %vm245_vm0, %v1001_v5 }
 0x291   : > { %v1670_v6 = vpop.f32.mrf.mxu2  ;;  %v2047_v7 = vpop.f32.mrf.mxu3 }
 0x292   : > { %2316 = vst [vmem:[%s3323_s11 + $0x5c0] sm:$0xff] %v1670_v6  ;;  %v1493_v8 = vpop.f32.mrf.mxu0  ;;  %v1870_v9 = vpop.f32.mrf.mxu1  ;;  %v952_v6 = vld [vmem:[#allocation2 + $0x1d8] sm:$0xff] }
 0x293   : > { %2317 = vst.msk [vmem:[%s3323_s11 + $0x5c8] sm:$0xff] %vm2132_vm1, %v2047_v7  ;;  %v1012_v7 = vld [vmem:[#allocation2 + $0x3b8] sm:$0xff] }
 0x294   : > { %2198 = vst [vmem:[%s3323_s11 + $0x210] sm:$0xff] %v1493_v8 }
 0x295   : > { %2199 = vst.msk [vmem:[%s3323_s11 + $0x218] sm:$0xff] %vm2132_vm1, %v1870_v9  ;;  %2641 = vmatmul.msk.f32.gmra.mxu0 %vm245_vm0, %v942_v10  ;;  %2761 = vmatmul.msk.f32.gmra.mxu1 %vm245_vm0, %v942_v10 }
 0x296   : > { %2701 = vmatmul.msk.f32.gmra.mxu2 %vm245_vm0, %v1002_v11  ;;  %2821 = vmatmul.msk.f32.gmra.mxu3 %vm245_vm0, %v1002_v11 }
 0x299   : > { %v1673_v12 = vpop.f32.mrf.mxu2  ;;  %v2050_v13 = vpop.f32.mrf.mxu3 }
 0x29a   : > { %2318 = vst [vmem:[%s3323_s11 + $0x5d0] sm:$0xff] %v1673_v12  ;;  %v1496_v14 = vpop.f32.mrf.mxu0  ;;  %v1873_v15 = vpop.f32.mrf.mxu1 }
 0x29b   : > { %2319 = vst.msk [vmem:[%s3323_s11 + $0x5d8] sm:$0xff] %vm2132_vm1, %v2050_v13 }
 0x29c   : > { %2200 = vst [vmem:[%s3323_s11 + $0x220] sm:$0xff] %v1496_v14 }
 0x29d   : > { %2201 = vst.msk [vmem:[%s3323_s11 + $0x228] sm:$0xff] %vm2132_vm1, %v1873_v15  ;;  %2642 = vmatmul.msk.f32.gmra.mxu0 %vm245_vm0, %v943_v16  ;;  %2762 = vmatmul.msk.f32.gmra.mxu1 %vm245_vm0, %v943_v16 }
 0x29e   : > { %2702 = vmatmul.msk.f32.gmra.mxu2 %vm245_vm0, %v1003_v17  ;;  %2822 = vmatmul.msk.f32.gmra.mxu3 %vm245_vm0, %v1003_v17 }
 0x2a1   : > { %v1676_v18 = vpop.f32.mrf.mxu2  ;;  %v2053_v19 = vpop.f32.mrf.mxu3 }
 0x2a2   : > { %2320 = vst [vmem:[%s3323_s11 + $0x5e0] sm:$0xff] %v1676_v18  ;;  %v1499_v20 = vpop.f32.mrf.mxu0  ;;  %v1876_v21 = vpop.f32.mrf.mxu1 }
 0x2a3   : > { %2321 = vst.msk [vmem:[%s3323_s11 + $0x5e8] sm:$0xff] %vm2132_vm1, %v2053_v19 }
 0x2a4   : > { %2202 = vst [vmem:[%s3323_s11 + $0x230] sm:$0xff] %v1499_v20 }
 0x2a5   : > { %2203 = vst.msk [vmem:[%s3323_s11 + $0x238] sm:$0xff] %vm2132_vm1, %v1876_v21  ;;  %2643 = vmatmul.msk.f32.gmra.mxu0 %vm245_vm0, %v944_v22  ;;  %2763 = vmatmul.msk.f32.gmra.mxu1 %vm245_vm0, %v944_v22 }
 0x2a6   : > { %2703 = vmatmul.msk.f32.gmra.mxu2 %vm245_vm0, %v1004_v23  ;;  %2823 = vmatmul.msk.f32.gmra.mxu3 %vm245_vm0, %v1004_v23 }
 0x2a9   : > { %v1679_v24 = vpop.f32.mrf.mxu2  ;;  %v2056_v25 = vpop.f32.mrf.mxu3 }
 0x2aa   : > { %2322 = vst [vmem:[%s3323_s11 + $0x5f0] sm:$0xff] %v1679_v24  ;;  %v1502_v26 = vpop.f32.mrf.mxu0  ;;  %v1879_v27 = vpop.f32.mrf.mxu1 }
 0x2ab   : > { %2323 = vst.msk [vmem:[%s3323_s11 + $0x5f8] sm:$0xff] %vm2132_vm1, %v2056_v25 }
 0x2ac   : > { %2204 = vst [vmem:[%s3323_s11 + $0x240] sm:$0xff] %v1502_v26 }
 0x2ad   : > { %2205 = vst.msk [vmem:[%s3323_s11 + $0x248] sm:$0xff] %vm2132_vm1, %v1879_v27  ;;  %2644 = vmatmul.msk.f32.gmra.mxu0 %vm245_vm0, %v945_v28  ;;  %2764 = vmatmul.msk.f32.gmra.mxu1 %vm245_vm0, %v945_v28 }
 0x2ae   : > { %2704 = vmatmul.msk.f32.gmra.mxu2 %vm245_vm0, %v1005_v29  ;;  %2824 = vmatmul.msk.f32.gmra.mxu3 %vm245_vm0, %v1005_v29 }
 0x2b1   : > { %v1682_v30 = vpop.f32.mrf.mxu2  ;;  %v2059_v31 = vpop.f32.mrf.mxu3 }
 0x2b2   : > { %2324 = vst [vmem:[%s3323_s11 + $0x600] sm:$0xff] %v1682_v30  ;;  %v1505_v32 = vpop.f32.mrf.mxu0  ;;  %v1882_v33 = vpop.f32.mrf.mxu1 }
 0x2b3   : > { %2325 = vst.msk [vmem:[%s3323_s11 + $0x608] sm:$0xff] %vm2132_vm1, %v2059_v31 }
 0x2b4   : > { %2206 = vst [vmem:[%s3323_s11 + $0x250] sm:$0xff] %v1505_v32 }
 0x2b5   : > { %2207 = vst.msk [vmem:[%s3323_s11 + $0x258] sm:$0xff] %vm2132_vm1, %v1882_v33  ;;  %2645 = vmatmul.msk.f32.gmra.mxu0 %vm245_vm0, %v946_v34  ;;  %2765 = vmatmul.msk.f32.gmra.mxu1 %vm245_vm0, %v946_v34 }
 0x2b6   : > { %2705 = vmatmul.msk.f32.gmra.mxu2 %vm245_vm0, %v1006_v35  ;;  %2825 = vmatmul.msk.f32.gmra.mxu3 %vm245_vm0, %v1006_v35 }
 0x2b9   : > { %v1685_v36 = vpop.f32.mrf.mxu2  ;;  %v2062_v37 = vpop.f32.mrf.mxu3 }
 0x2ba   : > { %2326 = vst [vmem:[%s3323_s11 + $0x610] sm:$0xff] %v1685_v36  ;;  %v1508_v38 = vpop.f32.mrf.mxu0  ;;  %v1885_v39 = vpop.f32.mrf.mxu1 }
 0x2bb   : > { %2327 = vst.msk [vmem:[%s3323_s11 + $0x618] sm:$0xff] %vm2132_vm1, %v2062_v37 }
 0x2bc   : > { %2208 = vst [vmem:[%s3323_s11 + $0x260] sm:$0xff] %v1508_v38 }
 0x2bd   : > { %2209 = vst.msk [vmem:[%s3323_s11 + $0x268] sm:$0xff] %vm2132_vm1, %v1885_v39  ;;  %2646 = vmatmul.msk.f32.gmra.mxu0 %vm245_vm0, %v947_v40  ;;  %2766 = vmatmul.msk.f32.gmra.mxu1 %vm245_vm0, %v947_v40 }
 0x2be   : > { %2706 = vmatmul.msk.f32.gmra.mxu2 %vm245_vm0, %v1007_v41  ;;  %2826 = vmatmul.msk.f32.gmra.mxu3 %vm245_vm0, %v1007_v41 }
 0x2c1   : > { %v1688_v42 = vpop.f32.mrf.mxu2  ;;  %v2065_v43 = vpop.f32.mrf.mxu3 }
 0x2c2   : > { %2328 = vst [vmem:[%s3323_s11 + $0x620] sm:$0xff] %v1688_v42  ;;  %v1511_v44 = vpop.f32.mrf.mxu0  ;;  %v1888_v45 = vpop.f32.mrf.mxu1 }
 0x2c3   : > { %2329 = vst.msk [vmem:[%s3323_s11 + $0x628] sm:$0xff] %vm2132_vm1, %v2065_v43 }
 0x2c4   : > { %2210 = vst [vmem:[%s3323_s11 + $0x270] sm:$0xff] %v1511_v44 }
 0x2c5   : > { %2211 = vst.msk [vmem:[%s3323_s11 + $0x278] sm:$0xff] %vm2132_vm1, %v1888_v45  ;;  %2647 = vmatmul.msk.f32.gmra.mxu0 %vm245_vm0, %v948_v46  ;;  %2767 = vmatmul.msk.f32.gmra.mxu1 %vm245_vm0, %v948_v46 }
 0x2c6   : > { %2707 = vmatmul.msk.f32.gmra.mxu2 %vm245_vm0, %v1008_v47  ;;  %2827 = vmatmul.msk.f32.gmra.mxu3 %vm245_vm0, %v1008_v47 }
 0x2c9   : > { %v1691_v48 = vpop.f32.mrf.mxu2  ;;  %v2068_v49 = vpop.f32.mrf.mxu3 }
 0x2ca   : > { %2330 = vst [vmem:[%s3323_s11 + $0x630] sm:$0xff] %v1691_v48  ;;  %v1514_v50 = vpop.f32.mrf.mxu0  ;;  %v1891_v51 = vpop.f32.mrf.mxu1 }
 0x2cb   : > { %2331 = vst.msk [vmem:[%s3323_s11 + $0x638] sm:$0xff] %vm2132_vm1, %v2068_v49 }
 0x2cc   : > { %2212 = vst [vmem:[%s3323_s11 + $0x280] sm:$0xff] %v1514_v50 }
 0x2cd   : > { %2213 = vst.msk [vmem:[%s3323_s11 + $0x288] sm:$0xff] %vm2132_vm1, %v1891_v51  ;;  %2648 = vmatmul.msk.f32.gmra.mxu0 %vm245_vm0, %v949_v52  ;;  %2768 = vmatmul.msk.f32.gmra.mxu1 %vm245_vm0, %v949_v52 }
 0x2ce   : > { %2708 = vmatmul.msk.f32.gmra.mxu2 %vm245_vm0, %v1009_v53  ;;  %2828 = vmatmul.msk.f32.gmra.mxu3 %vm245_vm0, %v1009_v53 }
 0x2d1   : > { %v1694_v54 = vpop.f32.mrf.mxu2  ;;  %v2071_v55 = vpop.f32.mrf.mxu3 }
 0x2d2   : > { %2332 = vst [vmem:[%s3323_s11 + $0x640] sm:$0xff] %v1694_v54  ;;  %v1517_v56 = vpop.f32.mrf.mxu0  ;;  %v1894_v57 = vpop.f32.mrf.mxu1 }
 0x2d3   : > { %2333 = vst.msk [vmem:[%s3323_s11 + $0x648] sm:$0xff] %vm2132_vm1, %v2071_v55 }
 0x2d4   : > { %2214 = vst [vmem:[%s3323_s11 + $0x290] sm:$0xff] %v1517_v56 }
 0x2d5   : > { %2215 = vst.msk [vmem:[%s3323_s11 + $0x298] sm:$0xff] %vm2132_vm1, %v1894_v57  ;;  %2649 = vmatmul.msk.f32.gmra.mxu0 %vm245_vm0, %v950_v58  ;;  %2769 = vmatmul.msk.f32.gmra.mxu1 %vm245_vm0, %v950_v58 }
 0x2d6   : > { %2709 = vmatmul.msk.f32.gmra.mxu2 %vm245_vm0, %v1010_v59  ;;  %2829 = vmatmul.msk.f32.gmra.mxu3 %vm245_vm0, %v1010_v59 }
 0x2d9   : > { %v1697_v60 = vpop.f32.mrf.mxu2  ;;  %v2074_v61 = vpop.f32.mrf.mxu3 }
 0x2da   : > { %2334 = vst [vmem:[%s3323_s11 + $0x650] sm:$0xff] %v1697_v60  ;;  %v1520_v62 = vpop.f32.mrf.mxu0  ;;  %v1897_v63 = vpop.f32.mrf.mxu1 }
 0x2db   : > { %2335 = vst.msk [vmem:[%s3323_s11 + $0x658] sm:$0xff] %vm2132_vm1, %v2074_v61 }
 0x2dc   : > { %2216 = vst [vmem:[%s3323_s11 + $0x2a0] sm:$0xff] %v1520_v62 }
 0x2dd   : > { %2217 = vst.msk [vmem:[%s3323_s11 + $0x2a8] sm:$0xff] %vm2132_vm1, %v1897_v63  ;;  %2650 = vmatmul.msk.f32.gmra.mxu0 %vm245_vm0, %v951_v0  ;;  %2770 = vmatmul.msk.f32.gmra.mxu1 %vm245_vm0, %v951_v0 }
 0x2de   : > { %2710 = vmatmul.msk.f32.gmra.mxu2 %vm245_vm0, %v1011_v1  ;;  %2830 = vmatmul.msk.f32.gmra.mxu3 %vm245_vm0, %v1011_v1 }
 0x2e1   : > { %v1700_v2 = vpop.f32.mrf.mxu2  ;;  %v2077_v3 = vpop.f32.mrf.mxu3 }
 0x2e2   : > { %2336 = vst [vmem:[%s3323_s11 + $0x660] sm:$0xff] %v1700_v2  ;;  %v1523_v4 = vpop.f32.mrf.mxu0  ;;  %v1900_v5 = vpop.f32.mrf.mxu1 }
 0x2e3   : > { %2337 = vst.msk [vmem:[%s3323_s11 + $0x668] sm:$0xff] %vm2132_vm1, %v2077_v3 }
 0x2e4   : > { %2218 = vst [vmem:[%s3323_s11 + $0x2b0] sm:$0xff] %v1523_v4 }
 0x2e5   : > { %2219 = vst.msk [vmem:[%s3323_s11 + $0x2b8] sm:$0xff] %vm2132_vm1, %v1900_v5  ;;  %2651 = vmatmul.msk.f32.gmra.mxu0 %vm245_vm0, %v952_v6  ;;  %2771 = vmatmul.msk.f32.gmra.mxu1 %vm245_vm0, %v952_v6 }
 0x2e6   : > { %2711 = vmatmul.msk.f32.gmra.mxu2 %vm245_vm0, %v1012_v7  ;;  %2831 = vmatmul.msk.f32.gmra.mxu3 %vm245_vm0, %v1012_v7 }
 0x2e9   : > { %v1703_v8 = vpop.f32.mrf.mxu2  ;;  %v2080_v9 = vpop.f32.mrf.mxu3 }
 0x2ea   : > { %2338 = vst [vmem:[%s3323_s11 + $0x670] sm:$0xff] %v1703_v8  ;;  %v1526_v10 = vpop.f32.mrf.mxu0  ;;  %v1903_v11 = vpop.f32.mrf.mxu1 }
 0x2eb   : > { %2339 = vst.msk [vmem:[%s3323_s11 + $0x678] sm:$0xff] %vm2132_vm1, %v2080_v9 }
 0x2ec   : > { %2220 = vst [vmem:[%s3323_s11 + $0x2c0] sm:$0xff] %v1526_v10 }
 0x2ed   : > { %2221 = vst.msk [vmem:[%s3323_s11 + $0x2c8] sm:$0xff] %vm2132_vm1, %v1903_v11 }
 0x2f1   : > { %v1706_v12 = vpop.f32.mrf.mxu2  ;;  %v2083_v13 = vpop.f32.mrf.mxu3 }
 0x2f2   : > { %2340 = vst [vmem:[%s3323_s11 + $0x680] sm:$0xff] %v1706_v12  ;;  %v1529_v14 = vpop.f32.mrf.mxu0  ;;  %v1906_v15 = vpop.f32.mrf.mxu1 }
 0x2f3   : > { %2341 = vst.msk [vmem:[%s3323_s11 + $0x688] sm:$0xff] %vm2132_vm1, %v2083_v13 }
 0x2f4   : > { %2222 = vst [vmem:[%s3323_s11 + $0x2d0] sm:$0xff] %v1529_v14 }
 0x2f5   : > { %2223 = vst.msk [vmem:[%s3323_s11 + $0x2d8] sm:$0xff] %vm2132_vm1, %v1906_v15 }
 0x2f9   : > { %v1709_v16 = vpop.f32.mrf.mxu2  ;;  %v2086_v17 = vpop.f32.mrf.mxu3 }
 0x2fa   : > { %2342 = vst [vmem:[%s3323_s11 + $0x690] sm:$0xff] %v1709_v16  ;;  %v1532_v18 = vpop.f32.mrf.mxu0  ;;  %v1909_v19 = vpop.f32.mrf.mxu1 }
 0x2fb   : > { %2343 = vst.msk [vmem:[%s3323_s11 + $0x698] sm:$0xff] %vm2132_vm1, %v2086_v17 }
 0x2fc   : > { %2224 = vst [vmem:[%s3323_s11 + $0x2e0] sm:$0xff] %v1532_v18 }
 0x2fd   : > { %2225 = vst.msk [vmem:[%s3323_s11 + $0x2e8] sm:$0xff] %vm2132_vm1, %v1909_v19 }
 0x301   : > { %v1712_v20 = vpop.f32.mrf.mxu2  ;;  %v2089_v21 = vpop.f32.mrf.mxu3 }
 0x302   : > { %2344 = vst [vmem:[%s3323_s11 + $0x6a0] sm:$0xff] %v1712_v20  ;;  %v1535_v22 = vpop.f32.mrf.mxu0  ;;  %v1912_v23 = vpop.f32.mrf.mxu1 }
 0x303   : > { %2345 = vst.msk [vmem:[%s3323_s11 + $0x6a8] sm:$0xff] %vm2132_vm1, %v2089_v21 }
 0x304   : > { %2226 = vst [vmem:[%s3323_s11 + $0x2f0] sm:$0xff] %v1535_v22 }
 0x305   : > { %2227 = vst.msk [vmem:[%s3323_s11 + $0x2f8] sm:$0xff] %vm2132_vm1, %v1912_v23 }
 0x309   : > { %v1715_v24 = vpop.f32.mrf.mxu2  ;;  %v2092_v25 = vpop.f32.mrf.mxu3 }
 0x30a   : > { %2346 = vst [vmem:[%s3323_s11 + $0x6b0] sm:$0xff] %v1715_v24  ;;  %v1538_v26 = vpop.f32.mrf.mxu0  ;;  %v1915_v27 = vpop.f32.mrf.mxu1 }
 0x30b   : > { %2347 = vst.msk [vmem:[%s3323_s11 + $0x6b8] sm:$0xff] %vm2132_vm1, %v2092_v25 }
 0x30c   : > { %2228 = vst [vmem:[%s3323_s11 + $0x300] sm:$0xff] %v1538_v26 }
 0x30d   : > { %2229 = vst.msk [vmem:[%s3323_s11 + $0x308] sm:$0xff] %vm2132_vm1, %v1915_v27 }
 0x311   : > { %v1718_v28 = vpop.f32.mrf.mxu2  ;;  %v2095_v29 = vpop.f32.mrf.mxu3 }
 0x312   : > { %2348 = vst [vmem:[%s3323_s11 + $0x6c0] sm:$0xff] %v1718_v28  ;;  %v1541_v30 = vpop.f32.mrf.mxu0  ;;  %v1918_v31 = vpop.f32.mrf.mxu1 }
 0x313   : > { %2349 = vst.msk [vmem:[%s3323_s11 + $0x6c8] sm:$0xff] %vm2132_vm1, %v2095_v29 }
 0x314   : > { %2230 = vst [vmem:[%s3323_s11 + $0x310] sm:$0xff] %v1541_v30 }
 0x315   : > { %2231 = vst.msk [vmem:[%s3323_s11 + $0x318] sm:$0xff] %vm2132_vm1, %v1918_v31 }
 0x319   : > { %v1721_v32 = vpop.f32.mrf.mxu2  ;;  %v2098_v33 = vpop.f32.mrf.mxu3 }
 0x31a   : > { %2350 = vst [vmem:[%s3323_s11 + $0x6d0] sm:$0xff] %v1721_v32  ;;  %v1544_v34 = vpop.f32.mrf.mxu0  ;;  %v1921_v35 = vpop.f32.mrf.mxu1 }
 0x31b   : > { %2351 = vst.msk [vmem:[%s3323_s11 + $0x6d8] sm:$0xff] %vm2132_vm1, %v2098_v33 }
 0x31c   : > { %2232 = vst [vmem:[%s3323_s11 + $0x320] sm:$0xff] %v1544_v34 }
 0x31d   : > { %2233 = vst.msk [vmem:[%s3323_s11 + $0x328] sm:$0xff] %vm2132_vm1, %v1921_v35 }
 0x321   : > { %v1724_v36 = vpop.f32.mrf.mxu2  ;;  %v2101_v37 = vpop.f32.mrf.mxu3 }
 0x322   : > { %2352 = vst [vmem:[%s3323_s11 + $0x6e0] sm:$0xff] %v1724_v36  ;;  %v1547_v38 = vpop.f32.mrf.mxu0  ;;  %v1924_v39 = vpop.f32.mrf.mxu1 }
 0x323   : > { %2353 = vst.msk [vmem:[%s3323_s11 + $0x6e8] sm:$0xff] %vm2132_vm1, %v2101_v37 }
 0x324   : > { %2234 = vst [vmem:[%s3323_s11 + $0x330] sm:$0xff] %v1547_v38 }
 0x325   : > { %2235 = vst.msk [vmem:[%s3323_s11 + $0x338] sm:$0xff] %vm2132_vm1, %v1924_v39 }
 0x329   : > { %v1727_v40 = vpop.f32.mrf.mxu2  ;;  %v2104_v41 = vpop.f32.mrf.mxu3 }
 0x32a   : > { %2354 = vst [vmem:[%s3323_s11 + $0x6f0] sm:$0xff] %v1727_v40  ;;  %v1550_v42 = vpop.f32.mrf.mxu0  ;;  %v1927_v43 = vpop.f32.mrf.mxu1 }
 0x32b   : > { %2355 = vst.msk [vmem:[%s3323_s11 + $0x6f8] sm:$0xff] %vm2132_vm1, %v2104_v41 }
 0x32c   : > { %2236 = vst [vmem:[%s3323_s11 + $0x340] sm:$0xff] %v1550_v42 }
 0x32d   : > { %2237 = vst.msk [vmem:[%s3323_s11 + $0x348] sm:$0xff] %vm2132_vm1, %v1927_v43 }
 0x331   : > { %v1730_v44 = vpop.f32.mrf.mxu2  ;;  %v2107_v45 = vpop.f32.mrf.mxu3 }
 0x332   : > { %2356 = vst [vmem:[%s3323_s11 + $0x700] sm:$0xff] %v1730_v44  ;;  %v1553_v46 = vpop.f32.mrf.mxu0  ;;  %v1930_v47 = vpop.f32.mrf.mxu1 }
 0x333   : > { %2357 = vst.msk [vmem:[%s3323_s11 + $0x708] sm:$0xff] %vm2132_vm1, %v2107_v45 }
 0x334   : > { %2238 = vst [vmem:[%s3323_s11 + $0x350] sm:$0xff] %v1553_v46 }
 0x335   : > { %2239 = vst.msk [vmem:[%s3323_s11 + $0x358] sm:$0xff] %vm2132_vm1, %v1930_v47 }
 0x339   : > { %v1733_v48 = vpop.f32.mrf.mxu2  ;;  %v2110_v49 = vpop.f32.mrf.mxu3 }
 0x33a   : > { %2358 = vst [vmem:[%s3323_s11 + $0x710] sm:$0xff] %v1733_v48  ;;  %v1556_v50 = vpop.f32.mrf.mxu0  ;;  %v1933_v51 = vpop.f32.mrf.mxu1 }
 0x33b   : > { %2359 = vst.msk [vmem:[%s3323_s11 + $0x718] sm:$0xff] %vm2132_vm1, %v2110_v49 }
 0x33c   : > { %2240 = vst [vmem:[%s3323_s11 + $0x360] sm:$0xff] %v1556_v50 }
 0x33d   : > { %2241 = vst.msk [vmem:[%s3323_s11 + $0x368] sm:$0xff] %vm2132_vm1, %v1933_v51 }
 0x341   : > { %v1736_v52 = vpop.f32.mrf.mxu2  ;;  %v2113_v53 = vpop.f32.mrf.mxu3 }
 0x342   : > { %2360 = vst [vmem:[%s3323_s11 + $0x720] sm:$0xff] %v1736_v52  ;;  %v1559_v54 = vpop.f32.mrf.mxu0  ;;  %v1936_v55 = vpop.f32.mrf.mxu1 }
 0x343   : > { %2361 = vst.msk [vmem:[%s3323_s11 + $0x728] sm:$0xff] %vm2132_vm1, %v2113_v53 }
 0x344   : > { %2242 = vst [vmem:[%s3323_s11 + $0x370] sm:$0xff] %v1559_v54 }
 0x345   : > { %2243 = vst.msk [vmem:[%s3323_s11 + $0x378] sm:$0xff] %vm2132_vm1, %v1936_v55 }
 0x349   : > { %v1739_v56 = vpop.f32.mrf.mxu2  ;;  %v2116_v57 = vpop.f32.mrf.mxu3 }
 0x34a   : > { %2362 = vst [vmem:[%s3323_s11 + $0x730] sm:$0xff] %v1739_v56  ;;  %v1562_v58 = vpop.f32.mrf.mxu0  ;;  %v1939_v59 = vpop.f32.mrf.mxu1 }
 0x34b   : > { %2363 = vst.msk [vmem:[%s3323_s11 + $0x738] sm:$0xff] %vm2132_vm1, %v2116_v57 }
 0x34c   : > { %2244 = vst [vmem:[%s3323_s11 + $0x380] sm:$0xff] %v1562_v58 }
 0x34d   : > { %2245 = vst.msk [vmem:[%s3323_s11 + $0x388] sm:$0xff] %vm2132_vm1, %v1939_v59 }
 0x351   : > { %v1742_v60 = vpop.f32.mrf.mxu2  ;;  %v2119_v61 = vpop.f32.mrf.mxu3 }
 0x352   : > { %2364 = vst [vmem:[%s3323_s11 + $0x740] sm:$0xff] %v1742_v60  ;;  %v1565_v62 = vpop.f32.mrf.mxu0  ;;  %v1942_v63 = vpop.f32.mrf.mxu1 }
 0x353   : > { %2365 = vst.msk [vmem:[%s3323_s11 + $0x748] sm:$0xff] %vm2132_vm1, %v2119_v61 }
 0x354   : > { %2246 = vst [vmem:[%s3323_s11 + $0x390] sm:$0xff] %v1565_v62 }
 0x355   : > { %2247 = vst.msk [vmem:[%s3323_s11 + $0x398] sm:$0xff] %vm2132_vm1, %v1942_v63 }
 0x359   : > { %v1745_v0 = vpop.f32.mrf.mxu2  ;;  %v2122_v1 = vpop.f32.mrf.mxu3 }
 0x35a   : > { %2366 = vst [vmem:[%s3323_s11 + $0x750] sm:$0xff] %v1745_v0  ;;  %v1568_v2 = vpop.f32.mrf.mxu0  ;;  %v1945_v3 = vpop.f32.mrf.mxu1 }
 0x35b   : > { %2367 = vst.msk [vmem:[%s3323_s11 + $0x758] sm:$0xff] %vm2132_vm1, %v2122_v1 }
 0x35c   : > { %2248 = vst [vmem:[%s3323_s11 + $0x3a0] sm:$0xff] %v1568_v2 }
 0x35d   : > { %2249 = vst.msk [vmem:[%s3323_s11 + $0x3a8] sm:$0xff] %vm2132_vm1, %v1945_v3 }
 0x361   : > { %v1748_v4 = vpop.f32.mrf.mxu2  ;;  %v2125_v5 = vpop.f32.mrf.mxu3 }
 0x362   : > { %2368 = vst [vmem:[%s3323_s11 + $0x760] sm:$0xff] %v1748_v4  ;;  %v1571_v6 = vpop.f32.mrf.mxu0  ;;  %v1948_v7 = vpop.f32.mrf.mxu1 }
 0x363   : > { %2369 = vst.msk [vmem:[%s3323_s11 + $0x768] sm:$0xff] %vm2132_vm1, %v2125_v5 }
 0x364   : > { %2250 = vst [vmem:[%s3323_s11 + $0x3b0] sm:$0xff] %v1571_v6 }
 0x365   : > { %2251 = vst.msk [vmem:[%s3323_s11 + $0x3b8] sm:$0xff] %vm2132_vm1, %v1948_v7 }
 0x369   : > { %v1751_v8 = vpop.f32.mrf.mxu2  ;;  %v2128_v9 = vpop.f32.mrf.mxu3 }
 0x36a   : > { %2370 = vst [vmem:[%s3323_s11 + $0x770] sm:$0xff] %v1751_v8 }
 0x36b   : > { %2371 = vst.msk [vmem:[%s3323_s11 + $0x778] sm:$0xff] %vm2132_vm1, %v2128_v9 }
 0x36c PF: > { %s15_s12 = sadd.s32 1, %s2947_s12  }
 0x36d   : > { %p12_p7 = scmp.ge.s32.totalorder %s15_s12, 6  }
 0x36f   :  { %14 = sbr.rel (!%p12_p7) target bundleno = 2 (0x2), region = 74 }
 0x374   :  { %2396 = vsyncpa [#allocation4], 1 }
 0x375   :  { %2398 = vsyncpa [#allocation4 + $0x1], 1 }
 0x376   :  { %2399 = vsyncpa [#allocation6], 1 }

</bundles_post_ra>
